<compile_context>
chip_gen: v7x
topology: tpu7x:2x2x1
jax: 0.10.0
libtpu: 0.0.40
codegen_flags: <defaults>
</compile_context>

<pallas_src>
import jax
import jax.numpy as jnp
from jax.experimental import pallas as pl
from jax.experimental.pallas import tpu as pltpu


# ------------------------------ fused kernel ---------------------------------


def make_fused_forward_kernel(num_heads, eps=1e-5):
    def kernel(x_ref, emb_w_ref, emb_b_ref,
               wqkv_ref, bqkv_ref, wo_ref, bo_ref,
               w1_ref, b1_ref, w2_ref, b2_ref,
               g1_ref, be1_ref, g2_ref, be2_ref,
               out_w_ref, out_b_ref,
               o_ref):
        _, S, Din = x_ref.shape            # block batch == 1: one sequence per grid step
        L, H, _ = wqkv_ref.shape
        nh = num_heads
        hd = H // nh

        def layernorm(z, gamma, beta):
            mu = jnp.mean(z, axis=-1, keepdims=True)
            var = jnp.mean((z - mu) ** 2, axis=-1, keepdims=True)
            return (z - mu) * jax.lax.rsqrt(var + eps) * gamma + beta

        # ---- embedding Linear: bf16 operands into the MXU, f32 accumulate ----
        x = x_ref[...].reshape(S, Din).astype(jnp.bfloat16)
        h = jnp.dot(x, emb_w_ref[...], preferred_element_type=jnp.float32)
        h = h + emb_b_ref[...]                                      # (S, H) f32

        # ---- encoder layers (static unroll; use fori_loop if L grows) --------
        for l in range(L):
            # fused Q/K/V projection: one (H, 3H) bf16 matmul.
            # 1/sqrt(hd) is already folded into Wq / bq on the host.
            qkv = jnp.dot(h.astype(jnp.bfloat16), wqkv_ref[l],
                          preferred_element_type=jnp.float32)
            qkv = qkv + bqkv_ref[l]                                 # (S, 3H) f32
            qkv16 = qkv.astype(jnp.bfloat16)

            # Head-batched layout (nh, S, hd): one batched score einsum, one softmax,
            # one batched PV einsum for ALL heads (no per-head matmul loop).
            qh = jnp.stack([qkv16[:, i * hd:(i + 1) * hd]
                            for i in range(nh)], axis=0)
            kh = jnp.stack([qkv16[:, H + i * hd:H + (i + 1) * hd]
                            for i in range(nh)], axis=0)
            vh = jnp.stack([qkv16[:, 2 * H + i * hd:2 * H + (i + 1) * hd]
                            for i in range(nh)], axis=0)

            s = jnp.einsum('hqd,hkd->hqk', qh, kh,
                           preferred_element_type=jnp.float32)      # (nh, S, S) f32
            s = s - jnp.max(s, axis=-1, keepdims=True)
            p = jnp.exp(s)
            p = p * pl.reciprocal(jnp.sum(p, axis=-1, keepdims=True),
                                  approx=True)                      # EUP slot
            oh = jnp.einsum('hqk,hkd->hqd', p.astype(jnp.bfloat16), vh,
                            preferred_element_type=jnp.float32)     # (nh, S, hd) f32

            # merge heads back to (S, H) and do ONE K=H output projection
            attn = jnp.concatenate([oh[i] for i in range(nh)], axis=-1)
            attn = jnp.dot(attn.astype(jnp.bfloat16), wo_ref[l],
                           preferred_element_type=jnp.float32) + bo_ref[l]

            # residual + norm1 (f32)
            h1 = layernorm(h + attn, g1_ref[l], be1_ref[l])

            # feed-forward (dim_ff == hidden, ReLU), bf16 matmul operands
            ff = jnp.dot(h1.astype(jnp.bfloat16), w1_ref[l],
                         preferred_element_type=jnp.float32)
            ff = jnp.maximum(ff + b1_ref[l], 0.0)
            ff = jnp.dot(ff.astype(jnp.bfloat16), w2_ref[l],
                         preferred_element_type=jnp.float32)
            ff = ff + b2_ref[l]

            # residual + norm2 (f32)
            h = layernorm(h1 + ff, g2_ref[l], be2_ref[l])

        # ---- mean over sequence + output Linear ------------------------------
        pooled = jnp.mean(h, axis=0, keepdims=True)                 # (1, H) f32
        out = jnp.dot(pooled.astype(jnp.bfloat16), out_w_ref[...],
                      preferred_element_type=jnp.float32)
        out = out + out_b_ref[...]
        o_ref[...] = out.reshape(o_ref.shape).astype(o_ref.dtype)

    return kernel


# ------------------------------ wrapper ---------------------------------------


def transformer_forward(x, params):
    B, S, Din = x.shape
    H = params["embed_w"].shape[1]
    Dout = params["out_w"].shape[1]
    layers = params["layers"]
    nh = params["num_heads"]
    hd = H // nh
    scale = 1.0 / (float(hd) ** 0.5)
    bf16 = jnp.bfloat16

    # Stack per-layer weights on a leading L axis; fuse (scaled) Wq|Wk|Wv -> (H, 3H).
    # MXU-feeding weights are cast to bf16; biases & LayerNorm params stay f32.
    wqkv = jnp.stack([jnp.concatenate([lp["wq"] * scale, lp["wk"], lp["wv"]], axis=1)
                      for lp in layers]).astype(bf16)                # (L, H, 3H)
    bqkv = jnp.stack([jnp.concatenate([lp["bq"] * scale, lp["bk"], lp["bv"]], axis=1)
                      for lp in layers])                             # (L, 1, 3H) f32
    wo = jnp.stack([lp["wo"] for lp in layers]).astype(bf16)
    bo = jnp.stack([lp["bo"] for lp in layers])
    w1 = jnp.stack([lp["w1"] for lp in layers]).astype(bf16)
    b1 = jnp.stack([lp["b1"] for lp in layers])
    w2 = jnp.stack([lp["w2"] for lp in layers]).astype(bf16)
    b2 = jnp.stack([lp["b2"] for lp in layers])
    g1 = jnp.stack([lp["g1"] for lp in layers])
    be1 = jnp.stack([lp["be1"] for lp in layers])
    g2 = jnp.stack([lp["g2"] for lp in layers])
    be2 = jnp.stack([lp["be2"] for lp in layers])

    inputs = [x,
              params["embed_w"].astype(bf16), params["embed_b"],
              wqkv, bqkv, wo, bo, w1, b1, w2, b2, g1, be1, g2, be2,
              params["out_w"].astype(bf16), params["out_b"]]

    # Weights (tiny here, well under the scoped VMEM limit) stay fully VMEM-resident
    # and un-pipelined; only the per-sequence input / output blocks move with the grid.
    vmem_resident = pl.BlockSpec(memory_space=pltpu.MemorySpace.VMEM)
    in_specs = ([pl.BlockSpec((1, S, Din), lambda b: (b, 0, 0))]
                + [vmem_resident] * (len(inputs) - 1))

    kernel = make_fused_forward_kernel(nh)
    out3 = pl.pallas_call(
        kernel,
        out_shape=jax.ShapeDtypeStruct((B, 1, Dout), jnp.float32),
        grid=(B,),
        in_specs=in_specs,
        out_specs=pl.BlockSpec((1, 1, Dout), lambda b: (b, 0, 0)),
        compiler_params=pltpu.CompilerParams(
            dimension_semantics=("parallel",),   # v7x: batch split across the 2 TCs
        ),
    )(*inputs)
    return out3.reshape(B, Dout)


# ------------------------- deterministic parameters --------------------------


def init_params(key, input_dim, hidden_dim, num_heads, output_dim, num_layers):
    keys = iter(jax.random.split(key, 8 + 16 * num_layers))

    def dense(din, dout, scale=0.05):
        # weights stored as (in, out) so kernels compute  x @ W  (== x @ W_pt.T)
        w = scale * jax.random.normal(next(keys), (din, dout), jnp.float32)
        b = scale * jax.random.normal(next(keys), (1, dout), jnp.float32)
        return w, b

    params = {"num_heads": num_heads}
    params["embed_w"], params["embed_b"] = dense(input_dim, hidden_dim)

    layers = []
    for _ in range(num_layers):
        lp = {}
        lp["wq"], lp["bq"] = dense(hidden_dim, hidden_dim)
        lp["wk"], lp["bk"] = dense(hidden_dim, hidden_dim)
        lp["wv"], lp["bv"] = dense(hidden_dim, hidden_dim)
        lp["wo"], lp["bo"] = dense(hidden_dim, hidden_dim)
        lp["w1"], lp["b1"] = dense(hidden_dim, hidden_dim)   # dim_feedforward == hidden_dim
        lp["w2"], lp["b2"] = dense(hidden_dim, hidden_dim)
        # LayerNorm params: PyTorch default init (gamma=1, beta=0)
        lp["g1"] = jnp.ones((1, hidden_dim), jnp.float32)
        lp["be1"] = jnp.zeros((1, hidden_dim), jnp.float32)
        lp["g2"] = jnp.ones((1, hidden_dim), jnp.float32)
        lp["be2"] = jnp.zeros((1, hidden_dim), jnp.float32)
        layers.append(lp)
    params["layers"] = layers

    params["out_w"], params["out_b"] = dense(hidden_dim, output_dim)
    return params


# ---------------------------------- main --------------------------------------


if __name__ == "__main__":
    # Small shapes consistent with the module's forward():
    #   x: (batch, seq, input_dim) -> Linear -> encoder stack -> mean(seq) -> Linear
    batch, seq = 2, 8
    input_dim, hidden_dim, num_heads, output_dim, num_layers = 64, 32, 4, 16, 2

    root = jax.random.PRNGKey(0)
    kx, kp = jax.random.split(root)
    x = jax.random.normal(kx, (batch, seq, input_dim), jnp.float32)
    params = init_params(kp, input_dim, hidden_dim, num_heads, output_dim, num_layers)

    out = transformer_forward(x, params)
    out = jax.block_until_ready(out)

    assert out.shape == (batch, output_dim), out.shape
    assert bool(jnp.all(jnp.isfinite(out)))
    print("KERNEL_OK")
</pallas_src>

<mosaic_0001>
module attributes {stable_mosaic.version = 11 : i64} {
  func.func @kernel(%arg0: i32, %arg1: memref<1x8x64xf32, #tpu.memory_space<vmem>>, %arg2: memref<64x32xbf16, #tpu.memory_space<vmem>>, %arg3: memref<1x32xf32, #tpu.memory_space<vmem>>, %arg4: memref<2x32x96xbf16, #tpu.memory_space<vmem>>, %arg5: memref<2x1x96xf32, #tpu.memory_space<vmem>>, %arg6: memref<2x32x32xbf16, #tpu.memory_space<vmem>>, %arg7: memref<2x1x32xf32, #tpu.memory_space<vmem>>, %arg8: memref<2x32x32xbf16, #tpu.memory_space<vmem>>, %arg9: memref<2x1x32xf32, #tpu.memory_space<vmem>>, %arg10: memref<2x32x32xbf16, #tpu.memory_space<vmem>>, %arg11: memref<2x1x32xf32, #tpu.memory_space<vmem>>, %arg12: memref<2x1x32xf32, #tpu.memory_space<vmem>>, %arg13: memref<2x1x32xf32, #tpu.memory_space<vmem>>, %arg14: memref<2x1x32xf32, #tpu.memory_space<vmem>>, %arg15: memref<2x1x32xf32, #tpu.memory_space<vmem>>, %arg16: memref<32x16xbf16, #tpu.memory_space<vmem>>, %arg17: memref<1x16xf32, #tpu.memory_space<vmem>>, %arg18: memref<1x1x16xf32, #tpu.memory_space<vmem>>) attributes {dimension_semantics = [#tpu.dimension_semantics<parallel>], iteration_bounds = array<i64: 2>, scalar_prefetch = 0 : i64, scratch_operands = 0 : i64, tpu.core_type = #tpu.core_type<tc>, window_params = [{transform_indices = @transform_0, window_bounds = array<i64: 1, 8, 64>}, {pipeline_mode = #tpu.pipeline_mode<synchronous>, transform_indices = @transform_1, window_bounds = array<i64: 64, 32>}, {pipeline_mode = #tpu.pipeline_mode<synchronous>, transform_indices = @transform_2, window_bounds = array<i64: 1, 32>}, {pipeline_mode = #tpu.pipeline_mode<synchronous>, transform_indices = @transform_3, window_bounds = array<i64: 2, 32, 96>}, {pipeline_mode = #tpu.pipeline_mode<synchronous>, transform_indices = @transform_4, window_bounds = array<i64: 2, 1, 96>}, {pipeline_mode = #tpu.pipeline_mode<synchronous>, transform_indices = @transform_5, window_bounds = array<i64: 2, 32, 32>}, {pipeline_mode = #tpu.pipeline_mode<synchronous>, transform_indices = @transform_6, window_bounds = array<i64: 2, 1, 32>}, {pipeline_mode = #tpu.pipeline_mode<synchronous>, transform_indices = @transform_7, window_bounds = array<i64: 2, 32, 32>}, {pipeline_mode = #tpu.pipeline_mode<synchronous>, transform_indices = @transform_8, window_bounds = array<i64: 2, 1, 32>}, {pipeline_mode = #tpu.pipeline_mode<synchronous>, transform_indices = @transform_9, window_bounds = array<i64: 2, 32, 32>}, {pipeline_mode = #tpu.pipeline_mode<synchronous>, transform_indices = @transform_10, window_bounds = array<i64: 2, 1, 32>}, {pipeline_mode = #tpu.pipeline_mode<synchronous>, transform_indices = @transform_11, window_bounds = array<i64: 2, 1, 32>}, {pipeline_mode = #tpu.pipeline_mode<synchronous>, transform_indices = @transform_12, window_bounds = array<i64: 2, 1, 32>}, {pipeline_mode = #tpu.pipeline_mode<synchronous>, transform_indices = @transform_13, window_bounds = array<i64: 2, 1, 32>}, {pipeline_mode = #tpu.pipeline_mode<synchronous>, transform_indices = @transform_14, window_bounds = array<i64: 2, 1, 32>}, {pipeline_mode = #tpu.pipeline_mode<synchronous>, transform_indices = @transform_15, window_bounds = array<i64: 32, 16>}, {pipeline_mode = #tpu.pipeline_mode<synchronous>, transform_indices = @transform_16, window_bounds = array<i64: 1, 16>}, {transform_indices = @transform_17, window_bounds = array<i64: 1, 1, 16>}]} {
    %c0 = arith.constant 0 : index
    %c0_0 = arith.constant 0 : index
    %c0_1 = arith.constant 0 : index
    %0 = vector.load %arg1[%c0, %c0_0, %c0_1] : memref<1x8x64xf32, #tpu.memory_space<vmem>>, vector<1x8x64xf32>
    %1 = vector.shape_cast %0 : vector<1x8x64xf32> to vector<8x64xf32>
    %2 = arith.truncf %1 : vector<8x64xf32> to vector<8x64xbf16>
    %c0_2 = arith.constant 0 : index
    %c0_3 = arith.constant 0 : index
    %3 = vector.load %arg2[%c0_2, %c0_3] : memref<64x32xbf16, #tpu.memory_space<vmem>>, vector<64x32xbf16>
    %cst = arith.constant dense<0.000000e+00> : vector<8x32xf32>
    %4 = tpu.matmul %2, %3, %cst {dimension_numbers = #tpu.dot_dimension_numbers<[1], [0], [0], [1], [0, 0, 1, 1], [], []>} : vector<8x64xbf16>, vector<64x32xbf16>, vector<8x32xf32> -> vector<8x32xf32>
    %c0_4 = arith.constant 0 : index
    %c0_5 = arith.constant 0 : index
    %5 = vector.load %arg3[%c0_4, %c0_5] : memref<1x32xf32, #tpu.memory_space<vmem>>, vector<1x32xf32>
    %6 = vector.broadcast %5 : vector<1x32xf32> to vector<8x32xf32>
    %7 = arith.addf %4, %6 : vector<8x32xf32>
    %8 = arith.truncf %7 : vector<8x32xf32> to vector<8x32xbf16>
    %c0_6 = arith.constant 0 : index
    %c0_7 = arith.constant 0 : index
    %c0_8 = arith.constant 0 : index
    %9 = vector.load %arg4[%c0_6, %c0_7, %c0_8] : memref<2x32x96xbf16, #tpu.memory_space<vmem>>, vector<1x32x96xbf16>
    %10 = vector.shape_cast %9 : vector<1x32x96xbf16> to vector<32x96xbf16>
    %cst_9 = arith.constant dense<0.000000e+00> : vector<8x96xf32>
    %11 = tpu.matmul %8, %10, %cst_9 {dimension_numbers = #tpu.dot_dimension_numbers<[1], [0], [0], [1], [0, 0, 1, 1], [], []>} : vector<8x32xbf16>, vector<32x96xbf16>, vector<8x96xf32> -> vector<8x96xf32>
    %c0_10 = arith.constant 0 : index
    %c0_11 = arith.constant 0 : index
    %c0_12 = arith.constant 0 : index
    %12 = vector.load %arg5[%c0_10, %c0_11, %c0_12] : memref<2x1x96xf32, #tpu.memory_space<vmem>>, vector<1x1x96xf32>
    %13 = vector.shape_cast %12 : vector<1x1x96xf32> to vector<1x96xf32>
    %14 = vector.broadcast %13 : vector<1x96xf32> to vector<8x96xf32>
    %15 = arith.addf %11, %14 : vector<8x96xf32>
    %16 = arith.truncf %15 : vector<8x96xf32> to vector<8x96xbf16>
    %17 = vector.extract_strided_slice %16 {offsets = [0, 0], sizes = [8, 8], strides = [1, 1]} : vector<8x96xbf16> to vector<8x8xbf16>
    %18 = vector.extract_strided_slice %16 {offsets = [0, 8], sizes = [8, 8], strides = [1, 1]} : vector<8x96xbf16> to vector<8x8xbf16>
    %19 = vector.extract_strided_slice %16 {offsets = [0, 16], sizes = [8, 8], strides = [1, 1]} : vector<8x96xbf16> to vector<8x8xbf16>
    %20 = vector.extract_strided_slice %16 {offsets = [0, 24], sizes = [8, 8], strides = [1, 1]} : vector<8x96xbf16> to vector<8x8xbf16>
    %21 = vector.shape_cast %17 : vector<8x8xbf16> to vector<1x8x8xbf16>
    %22 = vector.shape_cast %18 : vector<8x8xbf16> to vector<1x8x8xbf16>
    %23 = vector.shape_cast %19 : vector<8x8xbf16> to vector<1x8x8xbf16>
    %24 = vector.shape_cast %20 : vector<8x8xbf16> to vector<1x8x8xbf16>
    %25 = tpu.concatenate %21, %22, %23, %24 in 0 : vector<1x8x8xbf16>, vector<1x8x8xbf16>, vector<1x8x8xbf16>, vector<1x8x8xbf16> -> vector<4x8x8xbf16>
    %26 = vector.extract_strided_slice %16 {offsets = [0, 32], sizes = [8, 8], strides = [1, 1]} : vector<8x96xbf16> to vector<8x8xbf16>
    %27 = vector.extract_strided_slice %16 {offsets = [0, 40], sizes = [8, 8], strides = [1, 1]} : vector<8x96xbf16> to vector<8x8xbf16>
    %28 = vector.extract_strided_slice %16 {offsets = [0, 48], sizes = [8, 8], strides = [1, 1]} : vector<8x96xbf16> to vector<8x8xbf16>
    %29 = vector.extract_strided_slice %16 {offsets = [0, 56], sizes = [8, 8], strides = [1, 1]} : vector<8x96xbf16> to vector<8x8xbf16>
    %30 = vector.shape_cast %26 : vector<8x8xbf16> to vector<1x8x8xbf16>
    %31 = vector.shape_cast %27 : vector<8x8xbf16> to vector<1x8x8xbf16>
    %32 = vector.shape_cast %28 : vector<8x8xbf16> to vector<1x8x8xbf16>
    %33 = vector.shape_cast %29 : vector<8x8xbf16> to vector<1x8x8xbf16>
    %34 = tpu.concatenate %30, %31, %32, %33 in 0 : vector<1x8x8xbf16>, vector<1x8x8xbf16>, vector<1x8x8xbf16>, vector<1x8x8xbf16> -> vector<4x8x8xbf16>
    %35 = vector.extract_strided_slice %16 {offsets = [0, 64], sizes = [8, 8], strides = [1, 1]} : vector<8x96xbf16> to vector<8x8xbf16>
    %36 = vector.extract_strided_slice %16 {offsets = [0, 72], sizes = [8, 8], strides = [1, 1]} : vector<8x96xbf16> to vector<8x8xbf16>
    %37 = vector.extract_strided_slice %16 {offsets = [0, 80], sizes = [8, 8], strides = [1, 1]} : vector<8x96xbf16> to vector<8x8xbf16>
    %38 = vector.extract_strided_slice %16 {offsets = [0, 88], sizes = [8, 8], strides = [1, 1]} : vector<8x96xbf16> to vector<8x8xbf16>
    %39 = vector.shape_cast %35 : vector<8x8xbf16> to vector<1x8x8xbf16>
    %40 = vector.shape_cast %36 : vector<8x8xbf16> to vector<1x8x8xbf16>
    %41 = vector.shape_cast %37 : vector<8x8xbf16> to vector<1x8x8xbf16>
    %42 = vector.shape_cast %38 : vector<8x8xbf16> to vector<1x8x8xbf16>
    %43 = tpu.concatenate %39, %40, %41, %42 in 0 : vector<1x8x8xbf16>, vector<1x8x8xbf16>, vector<1x8x8xbf16>, vector<1x8x8xbf16> -> vector<4x8x8xbf16>
    "tpu.trace_start"() <{level = 10 : i32, message = "hqd,hkd->hqk"}> : () -> ()
    %cst_13 = arith.constant dense<0.000000e+00> : vector<4x8x8xf32>
    %44 = tpu.matmul %25, %34, %cst_13 {dimension_numbers = #tpu.dot_dimension_numbers<[2], [2], [1], [1], [0, 0, 0, 1, 1, 1], [0], [0]>} : vector<4x8x8xbf16>, vector<4x8x8xbf16>, vector<4x8x8xf32> -> vector<4x8x8xf32>
    "tpu.trace_stop"() : () -> ()
    %cst_14 = arith.constant dense<0xFF800000> : vector<4x8xf32>
    %45 = vector.multi_reduction <maximumf>, %44, %cst_14 [2] : vector<4x8x8xf32> to vector<4x8xf32>
    %46 = vector.shape_cast %45 : vector<4x8xf32> to vector<4x8x1xf32>
    %47 = vector.broadcast %46 : vector<4x8x1xf32> to vector<4x8x8xf32>
    %48 = arith.subf %44, %47 : vector<4x8x8xf32>
    %49 = math.exp %48 : vector<4x8x8xf32>
    %cst_15 = arith.constant dense<0.000000e+00> : vector<4x8xf32>
    %50 = vector.multi_reduction <add>, %49, %cst_15 [2] : vector<4x8x8xf32> to vector<4x8xf32>
    %51 = vector.shape_cast %50 : vector<4x8xf32> to vector<4x8x1xf32>
    %52 = tpu.reciprocal %51 {approx = true} : vector<4x8x1xf32> -> vector<4x8x1xf32>
    %53 = vector.broadcast %52 : vector<4x8x1xf32> to vector<4x8x8xf32>
    %54 = arith.mulf %49, %53 : vector<4x8x8xf32>
    %55 = arith.truncf %54 : vector<4x8x8xf32> to vector<4x8x8xbf16>
    "tpu.trace_start"() <{level = 10 : i32, message = "hqk,hkd->hqd"}> : () -> ()
    %cst_16 = arith.constant dense<0.000000e+00> : vector<4x8x8xf32>
    %56 = tpu.matmul %55, %43, %cst_16 {dimension_numbers = #tpu.dot_dimension_numbers<[2], [1], [1], [2], [0, 0, 0, 1, 1, 2], [0], [0]>} : vector<4x8x8xbf16>, vector<4x8x8xbf16>, vector<4x8x8xf32> -> vector<4x8x8xf32>
    "tpu.trace_stop"() : () -> ()
    %57 = vector.extract_strided_slice %56 {offsets = [0, 0, 0], sizes = [1, 8, 8], strides = [1, 1, 1]} : vector<4x8x8xf32> to vector<1x8x8xf32>
    %58 = vector.shape_cast %57 : vector<1x8x8xf32> to vector<8x8xf32>
    %59 = vector.extract_strided_slice %56 {offsets = [1, 0, 0], sizes = [1, 8, 8], strides = [1, 1, 1]} : vector<4x8x8xf32> to vector<1x8x8xf32>
    %60 = vector.shape_cast %59 : vector<1x8x8xf32> to vector<8x8xf32>
    %61 = vector.extract_strided_slice %56 {offsets = [2, 0, 0], sizes = [1, 8, 8], strides = [1, 1, 1]} : vector<4x8x8xf32> to vector<1x8x8xf32>
    %62 = vector.shape_cast %61 : vector<1x8x8xf32> to vector<8x8xf32>
    %63 = vector.extract_strided_slice %56 {offsets = [3, 0, 0], sizes = [1, 8, 8], strides = [1, 1, 1]} : vector<4x8x8xf32> to vector<1x8x8xf32>
    %64 = vector.shape_cast %63 : vector<1x8x8xf32> to vector<8x8xf32>
    %65 = tpu.concatenate %58, %60, %62, %64 in 1 : vector<8x8xf32>, vector<8x8xf32>, vector<8x8xf32>, vector<8x8xf32> -> vector<8x32xf32>
    %66 = arith.truncf %65 : vector<8x32xf32> to vector<8x32xbf16>
    %c0_17 = arith.constant 0 : index
    %c0_18 = arith.constant 0 : index
    %c0_19 = arith.constant 0 : index
    %67 = vector.load %arg6[%c0_17, %c0_18, %c0_19] : memref<2x32x32xbf16, #tpu.memory_space<vmem>>, vector<1x32x32xbf16>
    %68 = vector.shape_cast %67 : vector<1x32x32xbf16> to vector<32x32xbf16>
    %cst_20 = arith.constant dense<0.000000e+00> : vector<8x32xf32>
    %69 = tpu.matmul %66, %68, %cst_20 {dimension_numbers = #tpu.dot_dimension_numbers<[1], [0], [0], [1], [0, 0, 1, 1], [], []>} : vector<8x32xbf16>, vector<32x32xbf16>, vector<8x32xf32> -> vector<8x32xf32>
    %c0_21 = arith.constant 0 : index
    %c0_22 = arith.constant 0 : index
    %c0_23 = arith.constant 0 : index
    %70 = vector.load %arg7[%c0_21, %c0_22, %c0_23] : memref<2x1x32xf32, #tpu.memory_space<vmem>>, vector<1x1x32xf32>
    %71 = vector.shape_cast %70 : vector<1x1x32xf32> to vector<1x32xf32>
    %72 = vector.broadcast %71 : vector<1x32xf32> to vector<8x32xf32>
    %73 = arith.addf %69, %72 : vector<8x32xf32>
    %74 = arith.addf %7, %73 : vector<8x32xf32>
    %c0_24 = arith.constant 0 : index
    %c0_25 = arith.constant 0 : index
    %c0_26 = arith.constant 0 : index
    %75 = vector.load %arg12[%c0_24, %c0_25, %c0_26] : memref<2x1x32xf32, #tpu.memory_space<vmem>>, vector<1x1x32xf32>
    %76 = vector.shape_cast %75 : vector<1x1x32xf32> to vector<1x32xf32>
    %c0_27 = arith.constant 0 : index
    %c0_28 = arith.constant 0 : index
    %c0_29 = arith.constant 0 : index
    %77 = vector.load %arg13[%c0_27, %c0_28, %c0_29] : memref<2x1x32xf32, #tpu.memory_space<vmem>>, vector<1x1x32xf32>
    %78 = vector.shape_cast %77 : vector<1x1x32xf32> to vector<1x32xf32>
    %cst_30 = arith.constant dense<0.000000e+00> : vector<8xf32>
    %79 = vector.multi_reduction <add>, %74, %cst_30 [1] : vector<8x32xf32> to vector<8xf32>
    %80 = vector.shape_cast %79 : vector<8xf32> to vector<8x1xf32>
    %cst_31 = arith.constant 3.200000e+01 : f32
    %81 = vector.broadcast %cst_31 : f32 to vector<8x1xf32>
    %82 = arith.divf %80, %81 : vector<8x1xf32>
    %83 = vector.broadcast %82 : vector<8x1xf32> to vector<8x32xf32>
    %84 = arith.subf %74, %83 : vector<8x32xf32>
    %85 = arith.mulf %84, %84 : vector<8x32xf32>
    %cst_32 = arith.constant dense<0.000000e+00> : vector<8xf32>
    %86 = vector.multi_reduction <add>, %85, %cst_32 [1] : vector<8x32xf32> to vector<8xf32>
    %87 = vector.shape_cast %86 : vector<8xf32> to vector<8x1xf32>
    %cst_33 = arith.constant 3.200000e+01 : f32
    %88 = vector.broadcast %cst_33 : f32 to vector<8x1xf32>
    %89 = arith.divf %87, %88 : vector<8x1xf32>
    %90 = vector.broadcast %82 : vector<8x1xf32> to vector<8x32xf32>
    %91 = arith.subf %74, %90 : vector<8x32xf32>
    %cst_34 = arith.constant 9.99999974E-6 : f32
    %92 = vector.broadcast %cst_34 : f32 to vector<8x1xf32>
    %93 = arith.addf %89, %92 : vector<8x1xf32>
    %94 = math.rsqrt %93 : vector<8x1xf32>
    %95 = vector.broadcast %94 : vector<8x1xf32> to vector<8x32xf32>
    %96 = arith.mulf %91, %95 : vector<8x32xf32>
    %97 = vector.broadcast %76 : vector<1x32xf32> to vector<8x32xf32>
    %98 = arith.mulf %96, %97 : vector<8x32xf32>
    %99 = vector.broadcast %78 : vector<1x32xf32> to vector<8x32xf32>
    %100 = arith.addf %98, %99 : vector<8x32xf32>
    %101 = arith.truncf %100 : vector<8x32xf32> to vector<8x32xbf16>
    %c0_35 = arith.constant 0 : index
    %c0_36 = arith.constant 0 : index
    %c0_37 = arith.constant 0 : index
    %102 = vector.load %arg8[%c0_35, %c0_36, %c0_37] : memref<2x32x32xbf16, #tpu.memory_space<vmem>>, vector<1x32x32xbf16>
    %103 = vector.shape_cast %102 : vector<1x32x32xbf16> to vector<32x32xbf16>
    %cst_38 = arith.constant dense<0.000000e+00> : vector<8x32xf32>
    %104 = tpu.matmul %101, %103, %cst_38 {dimension_numbers = #tpu.dot_dimension_numbers<[1], [0], [0], [1], [0, 0, 1, 1], [], []>} : vector<8x32xbf16>, vector<32x32xbf16>, vector<8x32xf32> -> vector<8x32xf32>
    %c0_39 = arith.constant 0 : index
    %c0_40 = arith.constant 0 : index
    %c0_41 = arith.constant 0 : index
    %105 = vector.load %arg9[%c0_39, %c0_40, %c0_41] : memref<2x1x32xf32, #tpu.memory_space<vmem>>, vector<1x1x32xf32>
    %106 = vector.shape_cast %105 : vector<1x1x32xf32> to vector<1x32xf32>
    %107 = vector.broadcast %106 : vector<1x32xf32> to vector<8x32xf32>
    %108 = arith.addf %104, %107 : vector<8x32xf32>
    %cst_42 = arith.constant 0.000000e+00 : f32
    %109 = vector.broadcast %cst_42 : f32 to vector<8x32xf32>
    %110 = arith.maximumf %108, %109 : vector<8x32xf32>
    %111 = arith.truncf %110 : vector<8x32xf32> to vector<8x32xbf16>
    %c0_43 = arith.constant 0 : index
    %c0_44 = arith.constant 0 : index
    %c0_45 = arith.constant 0 : index
    %112 = vector.load %arg10[%c0_43, %c0_44, %c0_45] : memref<2x32x32xbf16, #tpu.memory_space<vmem>>, vector<1x32x32xbf16>
    %113 = vector.shape_cast %112 : vector<1x32x32xbf16> to vector<32x32xbf16>
    %cst_46 = arith.constant dense<0.000000e+00> : vector<8x32xf32>
    %114 = tpu.matmul %111, %113, %cst_46 {dimension_numbers = #tpu.dot_dimension_numbers<[1], [0], [0], [1], [0, 0, 1, 1], [], []>} : vector<8x32xbf16>, vector<32x32xbf16>, vector<8x32xf32> -> vector<8x32xf32>
    %c0_47 = arith.constant 0 : index
    %c0_48 = arith.constant 0 : index
    %c0_49 = arith.constant 0 : index
    %115 = vector.load %arg11[%c0_47, %c0_48, %c0_49] : memref<2x1x32xf32, #tpu.memory_space<vmem>>, vector<1x1x32xf32>
    %116 = vector.shape_cast %115 : vector<1x1x32xf32> to vector<1x32xf32>
    %117 = vector.broadcast %116 : vector<1x32xf32> to vector<8x32xf32>
    %118 = arith.addf %114, %117 : vector<8x32xf32>
    %119 = arith.addf %100, %118 : vector<8x32xf32>
    %c0_50 = arith.constant 0 : index
    %c0_51 = arith.constant 0 : index
    %c0_52 = arith.constant 0 : index
    %120 = vector.load %arg14[%c0_50, %c0_51, %c0_52] : memref<2x1x32xf32, #tpu.memory_space<vmem>>, vector<1x1x32xf32>
    %121 = vector.shape_cast %120 : vector<1x1x32xf32> to vector<1x32xf32>
    %c0_53 = arith.constant 0 : index
    %c0_54 = arith.constant 0 : index
    %c0_55 = arith.constant 0 : index
    %122 = vector.load %arg15[%c0_53, %c0_54, %c0_55] : memref<2x1x32xf32, #tpu.memory_space<vmem>>, vector<1x1x32xf32>
    %123 = vector.shape_cast %122 : vector<1x1x32xf32> to vector<1x32xf32>
    %cst_56 = arith.constant dense<0.000000e+00> : vector<8xf32>
    %124 = vector.multi_reduction <add>, %119, %cst_56 [1] : vector<8x32xf32> to vector<8xf32>
    %125 = vector.shape_cast %124 : vector<8xf32> to vector<8x1xf32>
    %cst_57 = arith.constant 3.200000e+01 : f32
    %126 = vector.broadcast %cst_57 : f32 to vector<8x1xf32>
    %127 = arith.divf %125, %126 : vector<8x1xf32>
    %128 = vector.broadcast %127 : vector<8x1xf32> to vector<8x32xf32>
    %129 = arith.subf %119, %128 : vector<8x32xf32>
    %130 = arith.mulf %129, %129 : vector<8x32xf32>
    %cst_58 = arith.constant dense<0.000000e+00> : vector<8xf32>
    %131 = vector.multi_reduction <add>, %130, %cst_58 [1] : vector<8x32xf32> to vector<8xf32>
    %132 = vector.shape_cast %131 : vector<8xf32> to vector<8x1xf32>
    %cst_59 = arith.constant 3.200000e+01 : f32
    %133 = vector.broadcast %cst_59 : f32 to vector<8x1xf32>
    %134 = arith.divf %132, %133 : vector<8x1xf32>
    %135 = vector.broadcast %127 : vector<8x1xf32> to vector<8x32xf32>
    %136 = arith.subf %119, %135 : vector<8x32xf32>
    %cst_60 = arith.constant 9.99999974E-6 : f32
    %137 = vector.broadcast %cst_60 : f32 to vector<8x1xf32>
    %138 = arith.addf %134, %137 : vector<8x1xf32>
    %139 = math.rsqrt %138 : vector<8x1xf32>
    %140 = vector.broadcast %139 : vector<8x1xf32> to vector<8x32xf32>
    %141 = arith.mulf %136, %140 : vector<8x32xf32>
    %142 = vector.broadcast %121 : vector<1x32xf32> to vector<8x32xf32>
    %143 = arith.mulf %141, %142 : vector<8x32xf32>
    %144 = vector.broadcast %123 : vector<1x32xf32> to vector<8x32xf32>
    %145 = arith.addf %143, %144 : vector<8x32xf32>
    %146 = arith.truncf %145 : vector<8x32xf32> to vector<8x32xbf16>
    %c1 = arith.constant 1 : index
    %c0_61 = arith.constant 0 : index
    %c0_62 = arith.constant 0 : index
    %147 = vector.load %arg4[%c1, %c0_61, %c0_62] : memref<2x32x96xbf16, #tpu.memory_space<vmem>>, vector<1x32x96xbf16>
    %148 = vector.shape_cast %147 : vector<1x32x96xbf16> to vector<32x96xbf16>
    %cst_63 = arith.constant dense<0.000000e+00> : vector<8x96xf32>
    %149 = tpu.matmul %146, %148, %cst_63 {dimension_numbers = #tpu.dot_dimension_numbers<[1], [0], [0], [1], [0, 0, 1, 1], [], []>} : vector<8x32xbf16>, vector<32x96xbf16>, vector<8x96xf32> -> vector<8x96xf32>
    %c1_64 = arith.constant 1 : index
    %c0_65 = arith.constant 0 : index
    %c0_66 = arith.constant 0 : index
    %150 = vector.load %arg5[%c1_64, %c0_65, %c0_66] : memref<2x1x96xf32, #tpu.memory_space<vmem>>, vector<1x1x96xf32>
    %151 = vector.shape_cast %150 : vector<1x1x96xf32> to vector<1x96xf32>
    %152 = vector.broadcast %151 : vector<1x96xf32> to vector<8x96xf32>
    %153 = arith.addf %149, %152 : vector<8x96xf32>
    %154 = arith.truncf %153 : vector<8x96xf32> to vector<8x96xbf16>
    %155 = vector.extract_strided_slice %154 {offsets = [0, 0], sizes = [8, 8], strides = [1, 1]} : vector<8x96xbf16> to vector<8x8xbf16>
    %156 = vector.extract_strided_slice %154 {offsets = [0, 8], sizes = [8, 8], strides = [1, 1]} : vector<8x96xbf16> to vector<8x8xbf16>
    %157 = vector.extract_strided_slice %154 {offsets = [0, 16], sizes = [8, 8], strides = [1, 1]} : vector<8x96xbf16> to vector<8x8xbf16>
    %158 = vector.extract_strided_slice %154 {offsets = [0, 24], sizes = [8, 8], strides = [1, 1]} : vector<8x96xbf16> to vector<8x8xbf16>
    %159 = vector.shape_cast %155 : vector<8x8xbf16> to vector<1x8x8xbf16>
    %160 = vector.shape_cast %156 : vector<8x8xbf16> to vector<1x8x8xbf16>
    %161 = vector.shape_cast %157 : vector<8x8xbf16> to vector<1x8x8xbf16>
    %162 = vector.shape_cast %158 : vector<8x8xbf16> to vector<1x8x8xbf16>
    %163 = tpu.concatenate %159, %160, %161, %162 in 0 : vector<1x8x8xbf16>, vector<1x8x8xbf16>, vector<1x8x8xbf16>, vector<1x8x8xbf16> -> vector<4x8x8xbf16>
    %164 = vector.extract_strided_slice %154 {offsets = [0, 32], sizes = [8, 8], strides = [1, 1]} : vector<8x96xbf16> to vector<8x8xbf16>
    %165 = vector.extract_strided_slice %154 {offsets = [0, 40], sizes = [8, 8], strides = [1, 1]} : vector<8x96xbf16> to vector<8x8xbf16>
    %166 = vector.extract_strided_slice %154 {offsets = [0, 48], sizes = [8, 8], strides = [1, 1]} : vector<8x96xbf16> to vector<8x8xbf16>
    %167 = vector.extract_strided_slice %154 {offsets = [0, 56], sizes = [8, 8], strides = [1, 1]} : vector<8x96xbf16> to vector<8x8xbf16>
    %168 = vector.shape_cast %164 : vector<8x8xbf16> to vector<1x8x8xbf16>
    %169 = vector.shape_cast %165 : vector<8x8xbf16> to vector<1x8x8xbf16>
    %170 = vector.shape_cast %166 : vector<8x8xbf16> to vector<1x8x8xbf16>
    %171 = vector.shape_cast %167 : vector<8x8xbf16> to vector<1x8x8xbf16>
    %172 = tpu.concatenate %168, %169, %170, %171 in 0 : vector<1x8x8xbf16>, vector<1x8x8xbf16>, vector<1x8x8xbf16>, vector<1x8x8xbf16> -> vector<4x8x8xbf16>
    %173 = vector.extract_strided_slice %154 {offsets = [0, 64], sizes = [8, 8], strides = [1, 1]} : vector<8x96xbf16> to vector<8x8xbf16>
    %174 = vector.extract_strided_slice %154 {offsets = [0, 72], sizes = [8, 8], strides = [1, 1]} : vector<8x96xbf16> to vector<8x8xbf16>
    %175 = vector.extract_strided_slice %154 {offsets = [0, 80], sizes = [8, 8], strides = [1, 1]} : vector<8x96xbf16> to vector<8x8xbf16>
    %176 = vector.extract_strided_slice %154 {offsets = [0, 88], sizes = [8, 8], strides = [1, 1]} : vector<8x96xbf16> to vector<8x8xbf16>
    %177 = vector.shape_cast %173 : vector<8x8xbf16> to vector<1x8x8xbf16>
    %178 = vector.shape_cast %174 : vector<8x8xbf16> to vector<1x8x8xbf16>
    %179 = vector.shape_cast %175 : vector<8x8xbf16> to vector<1x8x8xbf16>
    %180 = vector.shape_cast %176 : vector<8x8xbf16> to vector<1x8x8xbf16>
    %181 = tpu.concatenate %177, %178, %179, %180 in 0 : vector<1x8x8xbf16>, vector<1x8x8xbf16>, vector<1x8x8xbf16>, vector<1x8x8xbf16> -> vector<4x8x8xbf16>
    "tpu.trace_start"() <{level = 10 : i32, message = "hqd,hkd->hqk"}> : () -> ()
    %cst_67 = arith.constant dense<0.000000e+00> : vector<4x8x8xf32>
    %182 = tpu.matmul %163, %172, %cst_67 {dimension_numbers = #tpu.dot_dimension_numbers<[2], [2], [1], [1], [0, 0, 0, 1, 1, 1], [0], [0]>} : vector<4x8x8xbf16>, vector<4x8x8xbf16>, vector<4x8x8xf32> -> vector<4x8x8xf32>
    "tpu.trace_stop"() : () -> ()
    %cst_68 = arith.constant dense<0xFF800000> : vector<4x8xf32>
    %183 = vector.multi_reduction <maximumf>, %182, %cst_68 [2] : vector<4x8x8xf32> to vector<4x8xf32>
    %184 = vector.shape_cast %183 : vector<4x8xf32> to vector<4x8x1xf32>
    %185 = vector.broadcast %184 : vector<4x8x1xf32> to vector<4x8x8xf32>
    %186 = arith.subf %182, %185 : vector<4x8x8xf32>
    %187 = math.exp %186 : vector<4x8x8xf32>
    %cst_69 = arith.constant dense<0.000000e+00> : vector<4x8xf32>
    %188 = vector.multi_reduction <add>, %187, %cst_69 [2] : vector<4x8x8xf32> to vector<4x8xf32>
    %189 = vector.shape_cast %188 : vector<4x8xf32> to vector<4x8x1xf32>
    %190 = tpu.reciprocal %189 {approx = true} : vector<4x8x1xf32> -> vector<4x8x1xf32>
    %191 = vector.broadcast %190 : vector<4x8x1xf32> to vector<4x8x8xf32>
    %192 = arith.mulf %187, %191 : vector<4x8x8xf32>
    %193 = arith.truncf %192 : vector<4x8x8xf32> to vector<4x8x8xbf16>
    "tpu.trace_start"() <{level = 10 : i32, message = "hqk,hkd->hqd"}> : () -> ()
    %cst_70 = arith.constant dense<0.000000e+00> : vector<4x8x8xf32>
    %194 = tpu.matmul %193, %181, %cst_70 {dimension_numbers = #tpu.dot_dimension_numbers<[2], [1], [1], [2], [0, 0, 0, 1, 1, 2], [0], [0]>} : vector<4x8x8xbf16>, vector<4x8x8xbf16>, vector<4x8x8xf32> -> vector<4x8x8xf32>
    "tpu.trace_stop"() : () -> ()
    %195 = vector.extract_strided_slice %194 {offsets = [0, 0, 0], sizes = [1, 8, 8], strides = [1, 1, 1]} : vector<4x8x8xf32> to vector<1x8x8xf32>
    %196 = vector.shape_cast %195 : vector<1x8x8xf32> to vector<8x8xf32>
    %197 = vector.extract_strided_slice %194 {offsets = [1, 0, 0], sizes = [1, 8, 8], strides = [1, 1, 1]} : vector<4x8x8xf32> to vector<1x8x8xf32>
    %198 = vector.shape_cast %197 : vector<1x8x8xf32> to vector<8x8xf32>
    %199 = vector.extract_strided_slice %194 {offsets = [2, 0, 0], sizes = [1, 8, 8], strides = [1, 1, 1]} : vector<4x8x8xf32> to vector<1x8x8xf32>
    %200 = vector.shape_cast %199 : vector<1x8x8xf32> to vector<8x8xf32>
    %201 = vector.extract_strided_slice %194 {offsets = [3, 0, 0], sizes = [1, 8, 8], strides = [1, 1, 1]} : vector<4x8x8xf32> to vector<1x8x8xf32>
    %202 = vector.shape_cast %201 : vector<1x8x8xf32> to vector<8x8xf32>
    %203 = tpu.concatenate %196, %198, %200, %202 in 1 : vector<8x8xf32>, vector<8x8xf32>, vector<8x8xf32>, vector<8x8xf32> -> vector<8x32xf32>
    %204 = arith.truncf %203 : vector<8x32xf32> to vector<8x32xbf16>
    %c1_71 = arith.constant 1 : index
    %c0_72 = arith.constant 0 : index
    %c0_73 = arith.constant 0 : index
    %205 = vector.load %arg6[%c1_71, %c0_72, %c0_73] : memref<2x32x32xbf16, #tpu.memory_space<vmem>>, vector<1x32x32xbf16>
    %206 = vector.shape_cast %205 : vector<1x32x32xbf16> to vector<32x32xbf16>
    %cst_74 = arith.constant dense<0.000000e+00> : vector<8x32xf32>
    %207 = tpu.matmul %204, %206, %cst_74 {dimension_numbers = #tpu.dot_dimension_numbers<[1], [0], [0], [1], [0, 0, 1, 1], [], []>} : vector<8x32xbf16>, vector<32x32xbf16>, vector<8x32xf32> -> vector<8x32xf32>
    %c1_75 = arith.constant 1 : index
    %c0_76 = arith.constant 0 : index
    %c0_77 = arith.constant 0 : index
    %208 = vector.load %arg7[%c1_75, %c0_76, %c0_77] : memref<2x1x32xf32, #tpu.memory_space<vmem>>, vector<1x1x32xf32>
    %209 = vector.shape_cast %208 : vector<1x1x32xf32> to vector<1x32xf32>
    %210 = vector.broadcast %209 : vector<1x32xf32> to vector<8x32xf32>
    %211 = arith.addf %207, %210 : vector<8x32xf32>
    %212 = arith.addf %145, %211 : vector<8x32xf32>
    %c1_78 = arith.constant 1 : index
    %c0_79 = arith.constant 0 : index
    %c0_80 = arith.constant 0 : index
    %213 = vector.load %arg12[%c1_78, %c0_79, %c0_80] : memref<2x1x32xf32, #tpu.memory_space<vmem>>, vector<1x1x32xf32>
    %214 = vector.shape_cast %213 : vector<1x1x32xf32> to vector<1x32xf32>
    %c1_81 = arith.constant 1 : index
    %c0_82 = arith.constant 0 : index
    %c0_83 = arith.constant 0 : index
    %215 = vector.load %arg13[%c1_81, %c0_82, %c0_83] : memref<2x1x32xf32, #tpu.memory_space<vmem>>, vector<1x1x32xf32>
    %216 = vector.shape_cast %215 : vector<1x1x32xf32> to vector<1x32xf32>
    %cst_84 = arith.constant dense<0.000000e+00> : vector<8xf32>
    %217 = vector.multi_reduction <add>, %212, %cst_84 [1] : vector<8x32xf32> to vector<8xf32>
    %218 = vector.shape_cast %217 : vector<8xf32> to vector<8x1xf32>
    %cst_85 = arith.constant 3.200000e+01 : f32
    %219 = vector.broadcast %cst_85 : f32 to vector<8x1xf32>
    %220 = arith.divf %218, %219 : vector<8x1xf32>
    %221 = vector.broadcast %220 : vector<8x1xf32> to vector<8x32xf32>
    %222 = arith.subf %212, %221 : vector<8x32xf32>
    %223 = arith.mulf %222, %222 : vector<8x32xf32>
    %cst_86 = arith.constant dense<0.000000e+00> : vector<8xf32>
    %224 = vector.multi_reduction <add>, %223, %cst_86 [1] : vector<8x32xf32> to vector<8xf32>
    %225 = vector.shape_cast %224 : vector<8xf32> to vector<8x1xf32>
    %cst_87 = arith.constant 3.200000e+01 : f32
    %226 = vector.broadcast %cst_87 : f32 to vector<8x1xf32>
    %227 = arith.divf %225, %226 : vector<8x1xf32>
    %228 = vector.broadcast %220 : vector<8x1xf32> to vector<8x32xf32>
    %229 = arith.subf %212, %228 : vector<8x32xf32>
    %cst_88 = arith.constant 9.99999974E-6 : f32
    %230 = vector.broadcast %cst_88 : f32 to vector<8x1xf32>
    %231 = arith.addf %227, %230 : vector<8x1xf32>
    %232 = math.rsqrt %231 : vector<8x1xf32>
    %233 = vector.broadcast %232 : vector<8x1xf32> to vector<8x32xf32>
    %234 = arith.mulf %229, %233 : vector<8x32xf32>
    %235 = vector.broadcast %214 : vector<1x32xf32> to vector<8x32xf32>
    %236 = arith.mulf %234, %235 : vector<8x32xf32>
    %237 = vector.broadcast %216 : vector<1x32xf32> to vector<8x32xf32>
    %238 = arith.addf %236, %237 : vector<8x32xf32>
    %239 = arith.truncf %238 : vector<8x32xf32> to vector<8x32xbf16>
    %c1_89 = arith.constant 1 : index
    %c0_90 = arith.constant 0 : index
    %c0_91 = arith.constant 0 : index
    %240 = vector.load %arg8[%c1_89, %c0_90, %c0_91] : memref<2x32x32xbf16, #tpu.memory_space<vmem>>, vector<1x32x32xbf16>
    %241 = vector.shape_cast %240 : vector<1x32x32xbf16> to vector<32x32xbf16>
    %cst_92 = arith.constant dense<0.000000e+00> : vector<8x32xf32>
    %242 = tpu.matmul %239, %241, %cst_92 {dimension_numbers = #tpu.dot_dimension_numbers<[1], [0], [0], [1], [0, 0, 1, 1], [], []>} : vector<8x32xbf16>, vector<32x32xbf16>, vector<8x32xf32> -> vector<8x32xf32>
    %c1_93 = arith.constant 1 : index
    %c0_94 = arith.constant 0 : index
    %c0_95 = arith.constant 0 : index
    %243 = vector.load %arg9[%c1_93, %c0_94, %c0_95] : memref<2x1x32xf32, #tpu.memory_space<vmem>>, vector<1x1x32xf32>
    %244 = vector.shape_cast %243 : vector<1x1x32xf32> to vector<1x32xf32>
    %245 = vector.broadcast %244 : vector<1x32xf32> to vector<8x32xf32>
    %246 = arith.addf %242, %245 : vector<8x32xf32>
    %cst_96 = arith.constant 0.000000e+00 : f32
    %247 = vector.broadcast %cst_96 : f32 to vector<8x32xf32>
    %248 = arith.maximumf %246, %247 : vector<8x32xf32>
    %249 = arith.truncf %248 : vector<8x32xf32> to vector<8x32xbf16>
    %c1_97 = arith.constant 1 : index
    %c0_98 = arith.constant 0 : index
    %c0_99 = arith.constant 0 : index
    %250 = vector.load %arg10[%c1_97, %c0_98, %c0_99] : memref<2x32x32xbf16, #tpu.memory_space<vmem>>, vector<1x32x32xbf16>
    %251 = vector.shape_cast %250 : vector<1x32x32xbf16> to vector<32x32xbf16>
    %cst_100 = arith.constant dense<0.000000e+00> : vector<8x32xf32>
    %252 = tpu.matmul %249, %251, %cst_100 {dimension_numbers = #tpu.dot_dimension_numbers<[1], [0], [0], [1], [0, 0, 1, 1], [], []>} : vector<8x32xbf16>, vector<32x32xbf16>, vector<8x32xf32> -> vector<8x32xf32>
    %c1_101 = arith.constant 1 : index
    %c0_102 = arith.constant 0 : index
    %c0_103 = arith.constant 0 : index
    %253 = vector.load %arg11[%c1_101, %c0_102, %c0_103] : memref<2x1x32xf32, #tpu.memory_space<vmem>>, vector<1x1x32xf32>
    %254 = vector.shape_cast %253 : vector<1x1x32xf32> to vector<1x32xf32>
    %255 = vector.broadcast %254 : vector<1x32xf32> to vector<8x32xf32>
    %256 = arith.addf %252, %255 : vector<8x32xf32>
    %257 = arith.addf %238, %256 : vector<8x32xf32>
    %c1_104 = arith.constant 1 : index
    %c0_105 = arith.constant 0 : index
    %c0_106 = arith.constant 0 : index
    %258 = vector.load %arg14[%c1_104, %c0_105, %c0_106] : memref<2x1x32xf32, #tpu.memory_space<vmem>>, vector<1x1x32xf32>
    %259 = vector.shape_cast %258 : vector<1x1x32xf32> to vector<1x32xf32>
    %c1_107 = arith.constant 1 : index
    %c0_108 = arith.constant 0 : index
    %c0_109 = arith.constant 0 : index
    %260 = vector.load %arg15[%c1_107, %c0_108, %c0_109] : memref<2x1x32xf32, #tpu.memory_space<vmem>>, vector<1x1x32xf32>
    %261 = vector.shape_cast %260 : vector<1x1x32xf32> to vector<1x32xf32>
    %cst_110 = arith.constant dense<0.000000e+00> : vector<8xf32>
    %262 = vector.multi_reduction <add>, %257, %cst_110 [1] : vector<8x32xf32> to vector<8xf32>
    %263 = vector.shape_cast %262 : vector<8xf32> to vector<8x1xf32>
    %cst_111 = arith.constant 3.200000e+01 : f32
    %264 = vector.broadcast %cst_111 : f32 to vector<8x1xf32>
    %265 = arith.divf %263, %264 : vector<8x1xf32>
    %266 = vector.broadcast %265 : vector<8x1xf32> to vector<8x32xf32>
    %267 = arith.subf %257, %266 : vector<8x32xf32>
    %268 = arith.mulf %267, %267 : vector<8x32xf32>
    %cst_112 = arith.constant dense<0.000000e+00> : vector<8xf32>
    %269 = vector.multi_reduction <add>, %268, %cst_112 [1] : vector<8x32xf32> to vector<8xf32>
    %270 = vector.shape_cast %269 : vector<8xf32> to vector<8x1xf32>
    %cst_113 = arith.constant 3.200000e+01 : f32
    %271 = vector.broadcast %cst_113 : f32 to vector<8x1xf32>
    %272 = arith.divf %270, %271 : vector<8x1xf32>
    %273 = vector.broadcast %265 : vector<8x1xf32> to vector<8x32xf32>
    %274 = arith.subf %257, %273 : vector<8x32xf32>
    %cst_114 = arith.constant 9.99999974E-6 : f32
    %275 = vector.broadcast %cst_114 : f32 to vector<8x1xf32>
    %276 = arith.addf %272, %275 : vector<8x1xf32>
    %277 = math.rsqrt %276 : vector<8x1xf32>
    %278 = vector.broadcast %277 : vector<8x1xf32> to vector<8x32xf32>
    %279 = arith.mulf %274, %278 : vector<8x32xf32>
    %280 = vector.broadcast %259 : vector<1x32xf32> to vector<8x32xf32>
    %281 = arith.mulf %279, %280 : vector<8x32xf32>
    %282 = vector.broadcast %261 : vector<1x32xf32> to vector<8x32xf32>
    %283 = arith.addf %281, %282 : vector<8x32xf32>
    %cst_115 = arith.constant dense<0.000000e+00> : vector<32xf32>
    %284 = vector.multi_reduction <add>, %283, %cst_115 [0] : vector<8x32xf32> to vector<32xf32>
    %285 = vector.shape_cast %284 : vector<32xf32> to vector<1x32xf32>
    %cst_116 = arith.constant 8.000000e+00 : f32
    %286 = vector.broadcast %cst_116 : f32 to vector<1x32xf32>
    %287 = arith.divf %285, %286 : vector<1x32xf32>
    %288 = arith.truncf %287 : vector<1x32xf32> to vector<1x32xbf16>
    %c0_117 = arith.constant 0 : index
    %c0_118 = arith.constant 0 : index
    %289 = vector.load %arg16[%c0_117, %c0_118] : memref<32x16xbf16, #tpu.memory_space<vmem>>, vector<32x16xbf16>
    %cst_119 = arith.constant dense<0.000000e+00> : vector<1x16xf32>
    %290 = tpu.matmul %288, %289, %cst_119 {dimension_numbers = #tpu.dot_dimension_numbers<[1], [0], [0], [1], [0, 0, 1, 1], [], []>} : vector<1x32xbf16>, vector<32x16xbf16>, vector<1x16xf32> -> vector<1x16xf32>
    %c0_120 = arith.constant 0 : index
    %c0_121 = arith.constant 0 : index
    %291 = vector.load %arg17[%c0_120, %c0_121] : memref<1x16xf32, #tpu.memory_space<vmem>>, vector<1x16xf32>
    %292 = arith.addf %290, %291 : vector<1x16xf32>
    %293 = vector.shape_cast %292 : vector<1x16xf32> to vector<1x1x16xf32>
    %c0_122 = arith.constant 0 : index
    %c0_123 = arith.constant 0 : index
    %c0_124 = arith.constant 0 : index
    %294 = vector.load %arg18[%c0_122, %c0_123, %c0_124] : memref<1x1x16xf32, #tpu.memory_space<vmem>>, vector<1x1x16xf32>
    tpu.vector_store %arg18[%c0_122, %c0_123, %c0_124], %293 {strides = array<i32>} : memref<1x1x16xf32, #tpu.memory_space<vmem>>, vector<1x1x16xf32>,
    return
  }
  func.func @transform_0(%arg0: i32) -> (i32, i32, i32) {
    %c0_i32 = arith.constant 0 : i32
    %c0_i32_0 = arith.constant 0 : i32
    %c0_i32_1 = arith.constant 0 : i32
    return %arg0, %c0_i32, %c0_i32_0 : i32, i32, i32
  }
  func.func @transform_1(%arg0: i32) -> (i32, i32) {
    %c0_i32 = arith.constant 0 : i32
    %c0_i32_0 = arith.constant 0 : i32
    %c0_i32_1 = arith.constant 0 : i32
    return %c0_i32, %c0_i32_0 : i32, i32
  }
  func.func @transform_2(%arg0: i32) -> (i32, i32) {
    %c0_i32 = arith.constant 0 : i32
    %c0_i32_0 = arith.constant 0 : i32
    %c0_i32_1 = arith.constant 0 : i32
    return %c0_i32, %c0_i32_0 : i32, i32
  }
  func.func @transform_3(%arg0: i32) -> (i32, i32, i32) {
    %c0_i32 = arith.constant 0 : i32
    %c0_i32_0 = arith.constant 0 : i32
    %c0_i32_1 = arith.constant 0 : i32
    %c0_i32_2 = arith.constant 0 : i32
    return %c0_i32, %c0_i32_0, %c0_i32_1 : i32, i32, i32
  }
  func.func @transform_4(%arg0: i32) -> (i32, i32, i32) {
    %c0_i32 = arith.constant 0 : i32
    %c0_i32_0 = arith.constant 0 : i32
    %c0_i32_1 = arith.constant 0 : i32
    %c0_i32_2 = arith.constant 0 : i32
    return %c0_i32, %c0_i32_0, %c0_i32_1 : i32, i32, i32
  }
  func.func @transform_5(%arg0: i32) -> (i32, i32, i32) {
    %c0_i32 = arith.constant 0 : i32
    %c0_i32_0 = arith.constant 0 : i32
    %c0_i32_1 = arith.constant 0 : i32
    %c0_i32_2 = arith.constant 0 : i32
    return %c0_i32, %c0_i32_0, %c0_i32_1 : i32, i32, i32
  }
  func.func @transform_6(%arg0: i32) -> (i32, i32, i32) {
    %c0_i32 = arith.constant 0 : i32
    %c0_i32_0 = arith.constant 0 : i32
    %c0_i32_1 = arith.constant 0 : i32
    %c0_i32_2 = arith.constant 0 : i32
    return %c0_i32, %c0_i32_0, %c0_i32_1 : i32, i32, i32
  }
  func.func @transform_7(%arg0: i32) -> (i32, i32, i32) {
    %c0_i32 = arith.constant 0 : i32
    %c0_i32_0 = arith.constant 0 : i32
    %c0_i32_1 = arith.constant 0 : i32
    %c0_i32_2 = arith.constant 0 : i32
    return %c0_i32, %c0_i32_0, %c0_i32_1 : i32, i32, i32
  }
  func.func @transform_8(%arg0: i32) -> (i32, i32, i32) {
    %c0_i32 = arith.constant 0 : i32
    %c0_i32_0 = arith.constant 0 : i32
    %c0_i32_1 = arith.constant 0 : i32
    %c0_i32_2 = arith.constant 0 : i32
    return %c0_i32, %c0_i32_0, %c0_i32_1 : i32, i32, i32
  }
  func.func @transform_9(%arg0: i32) -> (i32, i32, i32) {
    %c0_i32 = arith.constant 0 : i32
    %c0_i32_0 = arith.constant 0 : i32
    %c0_i32_1 = arith.constant 0 : i32
    %c0_i32_2 = arith.constant 0 : i32
    return %c0_i32, %c0_i32_0, %c0_i32_1 : i32, i32, i32
  }
  func.func @transform_10(%arg0: i32) -> (i32, i32, i32) {
    %c0_i32 = arith.constant 0 : i32
    %c0_i32_0 = arith.constant 0 : i32
    %c0_i32_1 = arith.constant 0 : i32
    %c0_i32_2 = arith.constant 0 : i32
    return %c0_i32, %c0_i32_0, %c0_i32_1 : i32, i32, i32
  }
  func.func @transform_11(%arg0: i32) -> (i32, i32, i32) {
    %c0_i32 = arith.constant 0 : i32
    %c0_i32_0 = arith.constant 0 : i32
    %c0_i32_1 = arith.constant 0 : i32
    %c0_i32_2 = arith.constant 0 : i32
    return %c0_i32, %c0_i32_0, %c0_i32_1 : i32, i32, i32
  }
  func.func @transform_12(%arg0: i32) -> (i32, i32, i32) {
    %c0_i32 = arith.constant 0 : i32
    %c0_i32_0 = arith.constant 0 : i32
    %c0_i32_1 = arith.constant 0 : i32
    %c0_i32_2 = arith.constant 0 : i32
    return %c0_i32, %c0_i32_0, %c0_i32_1 : i32, i32, i32
  }
  func.func @transform_13(%arg0: i32) -> (i32, i32, i32) {
    %c0_i32 = arith.constant 0 : i32
    %c0_i32_0 = arith.constant 0 : i32
    %c0_i32_1 = arith.constant 0 : i32
    %c0_i32_2 = arith.constant 0 : i32
    return %c0_i32, %c0_i32_0, %c0_i32_1 : i32, i32, i32
  }
  func.func @transform_14(%arg0: i32) -> (i32, i32, i32) {
    %c0_i32 = arith.constant 0 : i32
    %c0_i32_0 = arith.constant 0 : i32
    %c0_i32_1 = arith.constant 0 : i32
    %c0_i32_2 = arith.constant 0 : i32
    return %c0_i32, %c0_i32_0, %c0_i32_1 : i32, i32, i32
  }
  func.func @transform_15(%arg0: i32) -> (i32, i32) {
    %c0_i32 = arith.constant 0 : i32
    %c0_i32_0 = arith.constant 0 : i32
    %c0_i32_1 = arith.constant 0 : i32
    return %c0_i32, %c0_i32_0 : i32, i32
  }
  func.func @transform_16(%arg0: i32) -> (i32, i32) {
    %c0_i32 = arith.constant 0 : i32
    %c0_i32_0 = arith.constant 0 : i32
    %c0_i32_1 = arith.constant 0 : i32
    return %c0_i32, %c0_i32_0 : i32, i32
  }
  func.func @transform_17(%arg0: i32) -> (i32, i32, i32) {
    %c0_i32 = arith.constant 0 : i32
    %c0_i32_0 = arith.constant 0 : i32
    %c0_i32_1 = arith.constant 0 : i32
    return %arg0, %c0_i32, %c0_i32_0 : i32, i32, i32
  }
}

</mosaic_0001>

<bundles_post_ra>
// kernel: tpu_custom_call.1
= control target key start
LH: loop header
LB: loop body
LE: loop exit
PB: predicated region body
PF: predicated region fallthrough
CT: control target
= control target key end

     0   :  { %s3919_s0 = inlined_call_operand.hbm [shape: f32[2,8,64], index: 0, kind: input, shape index: {}]   ;;  %s3920_s1 = inlined_call_operand.vmem [shape: bf16[64,32], index: 1, kind: input, shape index: {}]   ;;  %s3921_s2 = inlined_call_operand.hbm [shape: f32[1,32], index: 2, kind: input, shape index: {}]   ;;  %s3922_s3 = inlined_call_operand.vmem [shape: bf16[2,32,96], index: 3, kind: input, shape index: {}]   ;;  %s3923_s4 = inlined_call_operand.vmem [shape: f32[2,1,96], index: 4, kind: input, shape index: {}]   ;;  %s3924_s5 = inlined_call_operand.vmem [shape: bf16[2,32,32], index: 5, kind: input, shape index: {}]   ;;  %s3925_s6 = inlined_call_operand.hbm [shape: f32[2,1,32], index: 6, kind: input, shape index: {}]   ;;  %s3926_s7 = inlined_call_operand.vmem [shape: bf16[2,32,32], index: 7, kind: input, shape index: {}]   ;;  %s3927_s8 = inlined_call_operand.hbm [shape: f32[2,1,32], index: 8, kind: input, shape index: {}]   ;;  %s3928_s9 = inlined_call_operand.hbm [shape: bf16[2,32,32], index: 9, kind: input, shape index: {}]   ;;  %s3929_s10 = inlined_call_operand.vmem [shape: f32[2,1,32], index: 10, kind: input, shape index: {}]   ;;  %s3930_s11 = inlined_call_operand.vmem [shape: f32[2,1,32], index: 11, kind: input, shape index: {}]   ;;  %s3931_s12 = inlined_call_operand.vmem [shape: f32[2,1,32], index: 12, kind: input, shape index: {}]   ;;  %s3932_s13 = inlined_call_operand.vmem [shape: f32[2,1,32], index: 13, kind: input, shape index: {}]   ;;  %s3933_s14 = inlined_call_operand.vmem [shape: f32[2,1,32], index: 14, kind: input, shape index: {}]   ;;  %s3934_s15 = inlined_call_operand.vmem [shape: bf16[32,16], index: 15, kind: input, shape index: {}]   ;;  %s3935_s16 = inlined_call_operand.vmem [shape: f32[1,16], index: 16, kind: input, shape index: {}]   ;;  %s3936_s17 = inlined_call_operand.hbm [shape: f32[2,1,16], index: 17, kind: output, shape index: {}]  }
   0x1   :  { %3952 = sst [smem:[#allocation16_spill]] %s3919_s0 }
   0x2   :  { %3953 = sst [smem:[#allocation17_spill]] %s3920_s1 }
   0x3   :  { %3954 = sst [smem:[#allocation18_spill]] %s3921_s2 }
   0x4   :  { %3955 = sst [smem:[#allocation19_spill]] %s3925_s6 }
   0x5   :  { %3956 = sst [smem:[#allocation20_spill]] %s3927_s8 }
   0x6   :  { %3957 = sst [smem:[#allocation21_spill]] %s3928_s9 }
   0x7   :  { %3958 = sst [smem:[#allocation22_spill]] %s3932_s13 }
   0x8   :  { %3959 = sst [smem:[#allocation23_spill]] %s3933_s14 }
   0x9   :  { %3960 = sst [smem:[#allocation24_spill]] %s3934_s15 }
   0xa   :  { %3961 = sst [smem:[#allocation25_spill]] %s3935_s16 }
   0xb   :  { %3962 = sst [smem:[#allocation26_spill]] %s3936_s17 }
   0xc   :  { %22 = vsyncpa [#allocation3], 0 }
   0xd   :  { %24 = vsyncpa [#allocation3 + $0x1], 0 }
   0xe   :  { %25 = vsyncpa [#allocation6], 0 }
   0xf   :  { %26 = vsyncpa [#allocation9], 0 }
  0x10   :  { %27 = vsyncpa [#allocation4], 0 }
  0x11   :  { %29 = vsyncpa [#allocation4 + $0x1], 0  ;;  %s3316_s24 = smov 0   ;;  %s3318_s25 = smov 0  }
  0x12   :  { %s3320_s26 = smov 0   ;;  %s3322_s27 = smov 0  }
  0x13 LB: > { %s3206_s28 = smov [#allocation5]   ;;  %s3337_s0 = sadd.s32 4294967295, %s3204_s27   ;;  %s3204_s27 = sphi %s3322_s27, %s3998_s27   ;;  %s3200_s26 = sphi %s3320_s26, %s3997_s26   ;;  %s3196_s25 = sphi %s3318_s25, %s3996_s25   ;;  %s3192_s24 = sphi %s3316_s24, %s3995_s24  }
  0x14   : > { %s444_s29 = sshll.u32 %s3206_s28, 4  ;;  %p2481_p0 = scmp.ge.s32.totalorder %s3204_s27, 1  ;;  %s3342_s29 = int_to_ptr.vmem [resolvable:$true] %s444_s29 }
  0x15   : > { %p3943_p1 = scmp.eq.s32.totalorder %s3337_s0, 0  ;;  %p428_p2 = scmp.lt.s32.totalorder %s3204_s27, 3 }
  0x16   : > { %s3207_s18 = smov [#allocation8]   ;;  %s3208_s20 = smov [#allocation7]  }
  0x17   : > { %p3344_p3 = pnand %p2481_p0, %p428_p2  ;;  %s479_s19 = sshll.u32 %s3207_s18, 4  ;;  %s3357_s19 = int_to_ptr.vmem [resolvable:$true] %s479_s19 }
  0x18   : > { %s463_s21 = sshll.u32 %s3208_s20, 4  ;;  %s3965_s2 = sld [smem:[#allocation18_spill]]  ;;  %s3359_s21 = int_to_ptr.vmem [resolvable:$true] %s463_s21 }
  0x19   : > { %s3963_s30 = scalar_select %p3344_p3, 1, 0 }
  0x1a   : > { %p2845_p5 = pneg %p3344_p3 }
  0x1c   : > { %p3353_p6 = pnand %p2845_p5, %p3943_p1 }
  0x1e   : > { %s2988_s28 = scalar_lea.hbm %s3965_s2, 16  ;;  %p3369_p8 = pneg %p3353_p6 }
  0x1f   : > { %p2989_p7 = scmp.ne.s32.totalorder %s3965_s2, %s2988_s28  ;;  %p2995_p11 = scmp.lt.u32.totalorder %s2988_s28, %s3965_s2 }
  0x21   : > { %p2991_p9 = pnand %p3369_p8, %p2989_p7 }
  0x23   : > { %p2992_p10 = pneg %p2991_p9 }
  0x25   : > { %p2997_p12 = pnand %p2995_p11, %p2992_p10 }
  0x27   : > { %3000 = shalt.err (!%p2997_p12)
}
  0x28   : > { %s3001_s16 = scalar_lea.vmem %s3342_s29, 16  ;;  %s3008_s17 = scalar_lea.vmem %s3342_s29, 32 }
  0x29   : > { %p3002_p13 = scmp.ne.s32.totalorder %s3342_s29, %s3001_s16  ;;  %p3009_p5 = scmp.lt.s32.totalorder %s3342_s29, %s3342_s29 }
  0x2a   : > { %p3010_p7 = scmp.lt.s32.totalorder %s3008_s17, %s3001_s16 }
  0x2b   : > { %p3004_p0 = pnand %p3002_p13, %p3369_p8 }
  0x2c   : > { %p3011_p9 = por %p3010_p7, %p3009_p5 }
  0x2d   : > { %p3005_p2 = pneg %p3004_p0 }
  0x2f   : > { %p3012_p4 = pnand %p3011_p9, %p3005_p2 }
  0x31   : > { %3015 = shalt.err (!%p3012_p4)
}
  0x32   : > { %2848 = dma.hbm_to_vmem [thread:$0]  (!%p3353_p6), %s3965_s2, 16, %s3342_s29, [#allocation6]  }
  0x33   : > { %s3967_s8 = sld [smem:[#allocation20_spill]] }
  0x39   : > { %s3016_s20 = scalar_lea.hbm %s3967_s8, 32 }
  0x3a   : > { %p3017_p10 = scmp.ne.s32.totalorder %s3967_s8, %s3016_s20  ;;  %p3023_p4 = scmp.lt.u32.totalorder %s3016_s20, %s3967_s8 }
  0x3c   : > { %p3019_p11 = pnand %p3017_p10, %p3369_p8 }
  0x3e   : > { %p3020_p12 = pneg %p3019_p11 }
  0x40   : > { %p3025_p13 = pnand %p3023_p4, %p3020_p12 }
  0x42   : > { %3028 = shalt.err (!%p3025_p13)
}
  0x43   : > { %s3029_s29 = scalar_lea.vmem %s3357_s19, 32  ;;  %p3037_p7 = scmp.lt.s32.totalorder %s3357_s19, %s3357_s19 }
  0x44   : > { %p3030_p0 = scmp.ne.s32.totalorder %s3357_s19, %s3029_s29  ;;  %p3038_p9 = scmp.lt.s32.totalorder %s3029_s29, %s3029_s29 }
  0x46   : > { %p3032_p2 = pnand %p3030_p0, %p3369_p8  ;;  %p3039_p10 = por %p3038_p9, %p3037_p7 }
  0x48   : > { %p3033_p5 = pneg %p3032_p2 }
  0x4a   : > { %p3040_p11 = pnand %p3039_p10, %p3033_p5 }
  0x4c   : > { %3043 = shalt.err (!%p3040_p11)
}
  0x4d   : > { %s3209_s13 = smov 16   ;;  %s3210_s14 = smov 1  }
  0x4e   : > { %2854 = dma.hbm_to_vmem [thread:$0]  (!%p3353_p6), %s3967_s8, 32, %s3357_s19, [#allocation9], %s3209_s13, %s3209_s13, %s3210_s14  }
  0x4f   : > { %s3968_s6 = sld [smem:[#allocation19_spill]] }
  0x55   : > { %s3044_s20 = scalar_lea.hbm %s3968_s6, 32 }
  0x56   : > { %p3045_p12 = scmp.ne.s32.totalorder %s3968_s6, %s3044_s20  ;;  %p3051_p0 = scmp.lt.u32.totalorder %s3044_s20, %s3968_s6 }
  0x58   : > { %p3047_p4 = pnand %p3045_p12, %p3369_p8 }
  0x5a   : > { %p3048_p13 = pneg %p3047_p4 }
  0x5c   : > { %p3053_p2 = pnand %p3051_p0, %p3048_p13 }
  0x5e   : > { %3056 = shalt.err (!%p3053_p2)
}
  0x5f   : > { %s3057_s19 = scalar_lea.vmem %s3359_s21, 32  ;;  %p3065_p10 = scmp.lt.s32.totalorder %s3359_s21, %s3359_s21 }
  0x60   : > { %p3058_p5 = scmp.ne.s32.totalorder %s3359_s21, %s3057_s19  ;;  %p3066_p11 = scmp.lt.s32.totalorder %s3057_s19, %s3057_s19 }
  0x62   : > { %p3060_p7 = pnand %p3058_p5, %p3369_p8  ;;  %p3067_p12 = por %p3066_p11, %p3065_p10 }
  0x64   : > { %p3061_p9 = pneg %p3060_p7 }
  0x66   : > { %p3068_p4 = pnand %p3067_p12, %p3061_p9 }
  0x68   : > { %3071 = shalt.err (!%p3068_p4)
}
  0x69   : > { %2851 = dma.hbm_to_vmem [thread:$0]  (!%p3353_p6), %s3968_s6, 32, %s3359_s21, [#allocation6], %s3209_s13, %s3209_s13, %s3210_s14  }
  0x6a   : > { %s3211_s22 = smov [#allocation10]   ;;  %s3969_s9 = sld [smem:[#allocation21_spill]] }
  0x6b   : > { %s492_s23 = sshll.u32 %s3211_s22, 4  ;;  %s493_s23 = int_to_ptr.vmem [resolvable:$true] %s492_s23 }
  0x70   : > { %s3072_s16 = scalar_lea.hbm %s3969_s9, 512 }
  0x71   : > { %p3073_p13 = scmp.ne.s32.totalorder %s3969_s9, %s3072_s16  ;;  %p3079_p5 = scmp.lt.u32.totalorder %s3072_s16, %s3969_s9 }
  0x73   : > { %p3075_p0 = pnand %p3073_p13, %p3369_p8 }
  0x75   : > { %p3076_p2 = pneg %p3075_p0 }
  0x77   : > { %p3081_p7 = pnand %p3079_p5, %p3076_p2 }
  0x79   : > { %3084 = shalt.err (!%p3081_p7)
}
  0x7a   : > { %s3085_s21 = scalar_lea.vmem %s493_s23, 512  ;;  %p3093_p12 = scmp.lt.s32.totalorder %s493_s23, %s493_s23 }
  0x7b   : > { %p3086_p9 = scmp.ne.s32.totalorder %s493_s23, %s3085_s21  ;;  %p3094_p4 = scmp.lt.s32.totalorder %s3085_s21, %s3085_s21 }
  0x7d   : > { %p3088_p10 = pnand %p3086_p9, %p3369_p8  ;;  %p3095_p1 = por %p3094_p4, %p3093_p12 }
  0x7f   : > { %p3089_p11 = pneg %p3088_p10 }
  0x81   : > { %p3096_p3 = pnand %p3095_p1, %p3089_p11 }
  0x83   : > { %3099 = shalt.err (!%p3096_p3)
}
  0x84   : > { %s3212_s13 = smov 64   ;;  %s3213_s8 = smov 4  }
  0x85   : > { %2857 = dma.hbm_to_vmem [thread:$0]  (!%p3353_p6), %s3969_s9, 512, %s493_s23, [#allocation9], %s3212_s13, %s3212_s13, %s3213_s8  }
  0x86   : > { %s2480_s2 = sadd.s32 4294967294, %s3204_s27   ;;  %s3457_s15 = sadd.s32 1, %s3204_s27  }
  0x87   : > { %s39_s22 = ssub.s32 %s3204_s27, %s3457_s15  ;;  %s42_s28 = sadd.s32 1, %s3200_s26 }
  0x88   : > { %p40_p1 = scmp.eq.s32.totalorder %s39_s22, 0  ;;  %p49_p3 = scmp.ne.s32.totalorder %s3200_s26, %s3196_s25 }
  0x89   : > { %p50_p8 = scmp.eq.s32.totalorder %s3204_s27, 0  ;;  %p55_p13 = scmp.ne.s32.totalorder %s3196_s25, %s3192_s24 }
  0x8a   : > { %s3468_s20 = scalar_select %p40_p1, %s3200_s26, %s42_s28  }
  0x8b   : > { %p3470_p0 = por %p50_p8, %p49_p3  ;;  %p3971_p2 = scmp.eq.s32.totalorder %s3337_s0, 0 }
  0x8c   : > { %p415_p5 = scmp.eq.s32.totalorder %s3337_s0, 1  ;;  %p421_p7 = scmp.eq.s32.totalorder %s2480_s2, 1 }
  0x8d   : > { %p3476_p6 = por %p3971_p2, %p55_p13  ;;  %p2870_p9 = scmp.lt.s32.totalorder %s3204_s27, 2 }
  0x8e   : > { %s527_s16 = sand.u32 1, %s3200_s26   ;;  %p3483_p10 = por %p415_p5, %p49_p3 }
  0x8f   : > { %p3487_p11 = por %p421_p7, %p55_p13  ;;  %s2487_s19 = sshll.u32 %s527_s16, 3 }
  0x90   : > { %s3973_s17 = scalar_select %p3483_p10, 1, 0 }
  0x91   : > { %s3974_s29 = scalar_select %p3487_p11, 1, 0 }
  0x92   : > { %s2488_s21 = sshll.u32 %s3204_s27, 7  ;;  %s3975_s18 = sld [smem:[#allocation16_spill]] }
  0x93   : > { %s531_s2 = scalar_lea.vmem [#allocation2], %s2487_s19  ;;  %p3501_p12 = pnand %p2870_p9, %p3470_p0 }
  0x94   : > { %s538_s22 = sshll.u32 %s531_s2, 4  ;;  %s528_s6 = scalar_lea.sflag [#allocation3], %s527_s16  ;;  %s3497_s22 = int_to_ptr.vmem [resolvable:$true] %s538_s22 }
  0x95   : > { %p3102_p1 = pneg %p3501_p12 }
  0x98   : > { %s3495_s14 = scalar_lea.hbm %s3975_s18, %s2488_s21  ;;  %s3105_s13 = scalar_lea.hbm %s3975_s18, 256 }
  0x99   : > { %s3100_s9 = scalar_lea.hbm %s3495_s14, 128  ;;  %p3106_p13 = scmp.lt.u32.totalorder %s3495_s14, %s3975_s18 }
  0x9a   : > { %p3101_p4 = scmp.ne.s32.totalorder %s3495_s14, %s3100_s9  ;;  %p3107_p0 = scmp.lt.u32.totalorder %s3105_s13, %s3100_s9 }
  0x9b   : > { %p3109_p5 = scmp.lt.u32.totalorder %s3100_s9, %s3495_s14 }
  0x9c   : > { %p3103_p3 = pnand %p3102_p1, %p3101_p4  ;;  %p3108_p2 = por %p3107_p0, %p3106_p13 }
  0x9e   : > { %p3104_p8 = pneg %p3103_p3  ;;  %p3110_p7 = por %p3109_p5, %p3108_p2 }
  0xa0   : > { %p3111_p9 = pnand %p3110_p7, %p3104_p8 }
  0xa2   : > { %3114 = shalt.err (!%p3111_p9)
}
  0xa3   : > { %s3115_s16 = scalar_lea.vmem %s3497_s22, 128  ;;  %s3214_s2 = smov [#allocation2]  }
  0xa4   : > { %p3116_p4 = scmp.ne.s32.totalorder %s3497_s22, %s3115_s16  ;;  %s3120_s19 = sshll.u32 %s3214_s2, 4  ;;  %s3121_s19 = int_to_ptr.vmem [resolvable:$false] %s3120_s19 }
  0xa5   : > { %s3122_s21 = scalar_lea.vmem %s3121_s19, 256  ;;  %p3123_p10 = scmp.lt.s32.totalorder %s3497_s22, %s3121_s19 }
  0xa6   : > { %p3118_p3 = pnand %p3116_p4, %p3102_p1  ;;  %p3124_p13 = scmp.lt.s32.totalorder %s3122_s21, %s3115_s16 }
  0xa8   : > { %p3119_p11 = pneg %p3118_p3  ;;  %p3125_p0 = por %p3124_p13, %p3123_p10 }
  0xaa   : > { %p3126_p2 = pnand %p3125_p0, %p3119_p11 }
  0xac   : > { %3129 = shalt.err (!%p3126_p2)
}
  0xad   : > { %2861 = dma.hbm_to_vmem [thread:$0]  (!%p3501_p12), %s3495_s14, 128, %s3497_s22, %s528_s6  }
  0xae   : > { %p3977_p8 = scmp.ne.s32.totalorder %s3963_s30, 0 }
  0xaf   : > { %s3533_s9 = sand.u32 (!%p3977_p8), 1, %s3196_s25  }
  0xb0   : > { %547 = sbr.rel (%p3977_p8) target bundleno = 5871 (0x16ef), region = 88  ;;  %s2490_s13 = sshll.u32 (!%p3977_p8), %s3533_s9, 3 }
  0xb1   : > { %s550_s1 = scalar_lea.sflag (!%p3977_p8), [#allocation3], %s3533_s9  ;;  %s553_s8 = scalar_lea.vmem (!%p3977_p8), [#allocation2], %s2490_s13 }
  0xb7   : > { %3175 = dma.done.wait (%p3476_p6), %s550_s1, 128  }
  0xb8   : > { %3177 = vsyncadd (%p3476_p6), %s550_s1, 4294967168  ;;  %p3978_p10 = scmp.eq.s32.totalorder %s3337_s0, 0 }
  0xba   : > { %3179 = dma.done.wait (%p3978_p10), [#allocation6], 48   ;;  %p3979_p11 = pmov %p3978_p10 }
  0xbb   : > { %p3980_p12 = pmov %p3978_p10 }
  0xbc   : > { %3181 = vsyncadd (%p3979_p11), [#allocation6], 4294967248 }
  0xbd   : > { %3183 = dma.done.wait (%p3980_p12), [#allocation9], 544   ;;  %p3981_p1 = pmov %p3978_p10 }
  0xbe   : > { %v3215_v0 = vmov 0.0   ;;  %vm3216_vm0 = vmmov 0   ;;  %s3982_s23 = sld [smem:[#allocation17_spill]]  ;;  %v2930_v4 = vld [vmem:[%s3922_s3] sm:$0xff]   ;;  %vm661_vm1 = vcmask 523264   ;;  %v2931_v8 = vld [vmem:[%s3922_s3 + $0x8] sm:$0xff]  }
  0xbf   : > { %3185 = vsyncadd (%p3981_p1), [#allocation9], 4294966752  ;;  %2645 = vmatprep.subr.bf16.mxu0 %v3215_v0  ;;  %2653 = vmatprep.mubr.msk.bf16.mxu0 %vm3216_vm0, %v3215_v0  ;;  %v620_v6 = vld [vmem:[%s553_s8] sm:$0xff]  ;;  %v2495_v9 = vld [vmem:[#allocation5] ss:$0 sm:$0xff]  ;;  %vm729_vm2 = vcmask 261120  }
  0xc0   : > { %2657 = vmatprep.subr.bf16.mxu1 %v3215_v0  ;;  %2661 = vmatprep.mubr.msk.bf16.mxu1 %vm3216_vm0, %v3215_v0  ;;  %v621_v7 = vpack.c.bf16 %v620_v6, %v620_v6  ;;  %v2501_v16 = vld [vmem:[%s3923_s4] ss:$0 sm:$0xff]  ;;  %s3217_s14 = smov 104   ;;  %s3218_s22 = smov 120   ;;  %vm783_vm3 = vcmask 64512   ;;  %vm1027_vm4 = vcmask 1043456  }
  0xc1   : > { %2658 = vmatpush3.bf16.msra.mxu1 %v2930_v4  ;;  %s3219_s28 = smov 96   ;;  %s3220_s16 = smov 112   ;;  %vm1228_vm5 = vcmask 130048   ;;  %vm1230_vm6 = vcmask 195584   ;;  %vm2361_vm7 = vcmask 122880  }
  0xc2   : > { %2659 = vmatprep.subr.bf16.mxu1 %v3215_v0  ;;  %s3949_s2 = smov 64   ;;  %s3948_s6 = smov 8  }
  0xc3   : > { %s3947_s8 = smov 16   ;;  %s3946_s30 = smov 24  }
  0xc4   : > { %v2926_v1 = vld [vmem:[%s3982_s23] sm:$0xff]   ;;  %v2927_v2 = vld [vmem:[%s3982_s23 + $0x8] sm:$0xff]   ;;  %v2928_v3 = vld [vmem:[%s3982_s23 + $0x10] sm:$0xff]   ;;  %s3987_s13 = smov 16   ;;  %s3988_s1 = smov 24  }
  0xc5   : > { %2646 = vmatpush3.bf16.msra.mxu0 %v2926_v1  ;;  %v2929_v5 = vld [vmem:[%s3982_s23 + $0x18] sm:$0xff]   ;;  %2660 = vmatpush3.bf16.msra.mxu1 %v2931_v8  ;;  %s3990_s21 = sld [smem:[#allocation25_spill]]  ;;  %p3992_p5 = scmp.ne.s32.totalorder %s3973_s17, 0 }
  0xc6   : > { %2647 = vmatprep.subr.bf16.mxu0 %v3215_v0  ;;  %2665 = vmatprep.subr.bf16.mxu1 %v3215_v0  ;;  %s3225_s19 = smov [#allocation11]  }
  0xc9   : > { %2648 = vmatpush3.bf16.msra.mxu0 %v2927_v2 }
  0xca   : > { %2649 = vmatprep.subr.bf16.mxu0 %v3215_v0 }
  0xcd   : > { %2650 = vmatpush3.bf16.msra.mxu0 %v2928_v3 }
  0xce   : > { %2651 = vmatprep.subr.bf16.mxu0 %v3215_v0 }
  0xd1   : > { %2652 = vmatpush3.bf16.msra.mxu0 %v2929_v5 }
  0xd2   : > { %2671 = vmatprep.subr.bf16.mxu0 %v3215_v0 }
  0xd4   : > { %2654 = vmatmul.mubr.msk.bf16.vlgmr.msra.gmra.mrb[0].mxu0 %vm661_vm1, %v621_v7 }
  0xd5   : > { %2673 = vmatprep.mubr.msk.bf16.mxu0 %vm3216_vm0, %v3215_v0 }
 0x1a7   : > { %v699_v10 = vpop.f32.mrb[0].mxu0 }
 0x1a8   : > { %v3581_v11 = vadd.f32 %v2495_v9, %v699_v10  ;;  %v2655_v12 = vpop.f32.mrb[1].mxu0 }
 0x1a9   : > { %v702_v13 = vpop.f32.mrb[2].mxu0 }
 0x1aa   : > { %v705_v14 = vpack.c.bf16 %v3581_v11, %v3581_v11  ;;  %v2656_v15 = vpop.f32.mrb[3].mxu0 }
 0x1ac   : > { %2662 = vmatmul.mubr.msk.bf16.vlgmr.msra.gmra.mrb[0].mxu1 %vm729_vm2, %v705_v14 }
 0x1ad   : > { %2667 = vmatprep.mubr.msk.bf16.mxu1 %vm3216_vm0, %v3215_v0 }
 0x27f   : > { %v767_v17 = vpop.f32.mrb[0].mxu1 }
 0x280   : > { %v768_v18 = vadd.f32 %v2501_v16, %v767_v17  ;;  %v2663_v19 = vpop.f32.mrb[1].mxu1 }
 0x281   : > { %v770_v20 = vpop.f32.mrb[2].mxu1 }
 0x282   : > { %v3591_v21 = vpack.c.bf16 %v768_v18, %v768_v18  ;;  %v2664_v22 = vpop.f32.mrb[3].mxu1 }
 0x284   : > { %779 = vrot.lane.b32.xlu1 %v3591_v21, %s3217_s14  ;;  %775 = vrot.lane.b32.xlu0 %v3591_v21, %s3218_s22 }
 0x288   : > { %781 = vrot.lane.b32.xlu1 %v3591_v21, %s3219_s28  ;;  %777 = vrot.lane.b32.xlu0 %v3591_v21, %s3220_s16 }
 0x2f6   : > { %v3601_v23 = vpop.permute.xlu1 %779  ;;  %v776_v24 = vpop.permute.xlu0 %775 }
 0x2f7   : > { %830 = vrot.lane.b32.xlu0 %v776_v24, %s3219_s28 }
 0x2fa   : > { %v782_v25 = vpop.permute.xlu1 %781  ;;  %v3604_v26 = vpop.permute.xlu0 %777 }
 0x2fb   : > { %v788_v27 = vsel %vm783_vm3, %v782_v25, 0  ;;  %926 = vrot.lane.b32.xlu0 %v3601_v23, %s3219_s28  ;;  %878 = vrot.lane.b32.xlu1 %v3604_v26, %s3219_s28 }
 0x2fc   : > { %2666 = vmatpush3.bf16.xpose.msra.mxu1 %v788_v27 }
 0x2fd   : > { %2677 = vmatprep.subr.bf16.mxu1 %v3215_v0 }
 0x303   : > { %2668 = vmatmul.mubr.msk.bf16.vlgmr.msra.gmra.mrb[4].mxu1 %vm783_vm3, %v3591_v21 }
 0x304   : > { %2679 = vmatprep.mubr.msk.bf16.mxu1 %vm3216_vm0, %v3215_v0 }
 0x369   : > { %v831_v28 = vpop.permute.xlu0 %830 }
 0x36a   : > { %v836_v29 = vsel %vm783_vm3, %v831_v28, 0 }
 0x36b   : > { %2672 = vmatpush3.bf16.xpose.msra.mxu0 %v836_v29 }
 0x36c   : > { %2683 = vmatprep.subr.bf16.mxu0 %v3215_v0 }
 0x36d   : > { %v879_v30 = vpop.permute.xlu1 %878  ;;  %v927_v32 = vpop.permute.xlu0 %926 }
 0x36e   : > { %v884_v31 = vsel %vm783_vm3, %v879_v30, 0  ;;  %v932_v33 = vsel %vm783_vm3, %v927_v32, 0 }
 0x36f   : > { %2678 = vmatpush3.bf16.xpose.msra.mxu1 %v884_v31 }
 0x370   : > { %2689 = vmatprep.subr.bf16.mxu1 %v3215_v0 }
 0x372   : > { %2674 = vmatmul.mubr.msk.bf16.vlgmr.msra.gmra.mrb[4].mxu0 %vm783_vm3, %v776_v24 }
 0x373   : > { %2684 = vmatpush3.bf16.xpose.msra.mxu0 %v932_v33  ;;  %2685 = vmatprep.mubr.msk.bf16.mxu0 %vm3216_vm0, %v3215_v0 }
 0x374   : > { %2695 = vmatprep.subr.bf16.mxu0 %v3215_v0 }
 0x376   : > { %2680 = vmatmul.mubr.msk.bf16.vlgmr.msra.gmra.mrb[8].mxu1 %vm783_vm3, %v3604_v26 }
 0x377   : > { %2691 = vmatprep.mubr.msk.bf16.mxu1 %vm3216_vm0, %v3215_v0 }
 0x37a   : > { %2686 = vmatmul.mubr.msk.bf16.vlgmr.msra.gmra.mrb[8].mxu0 %vm783_vm3, %v3601_v23 }
 0x37b   : > { %2697 = vmatprep.mubr.msk.bf16.mxu0 %vm3216_vm0, %v3215_v0 }
 0x3d6   : > { %v824_v34 = vpop.f32.mrb[4].mxu1 }
 0x3d7   : > { %v2669_v35 = vpop.f32.mrb[5].mxu1  ;;  %v974_v36 = vsel %vm783_vm3, %v824_v34, -inf }
 0x3d8   : > { %975 = vmax.xlane.f32.xlu1 %v974_v36  ;;  %v827_v37 = vpop.f32.mrb[6].mxu1 }
 0x3d9   : > { %v2670_v38 = vpop.f32.mrb[7].mxu1 }
 0x445   : > { %v872_v39 = vpop.f32.mrb[4].mxu0 }
 0x446   : > { %v2675_v40 = vpop.f32.mrb[5].mxu0  ;;  %v977_v41 = vsel %vm783_vm3, %v872_v39, -inf }
 0x447   : > { %978 = vmax.xlane.f32.xlu0 %v977_v41  ;;  %v875_v42 = vpop.f32.mrb[6].mxu0  ;;  %v2932_v40 = vld [vmem:[%s3924_s5] sm:$0xff]   ;;  %v2933_v41 = vld [vmem:[%s3924_s5 + $0x8] sm:$0xff]  }
 0x448   : > { %v2676_v43 = vpop.f32.mrb[7].mxu0 }
 0x449   : > { %v920_v44 = vpop.f32.mrb[8].mxu1 }
 0x44a   : > { %v2681_v45 = vpop.f32.mrb[9].mxu1  ;;  %v980_v46 = vsel %vm783_vm3, %v920_v44, -inf }
 0x44b   : > { %v923_v47 = vpop.f32.mrb[10].mxu1  ;;  %981 = vmax.xlane.f32.xlu0 %v980_v46 }
 0x44c   : > { %v2682_v48 = vpop.f32.mrb[11].mxu1 }
 0x44d   : > { %v968_v49 = vpop.f32.mrb[8].mxu0 }
 0x44e   : > { %v2687_v50 = vpop.f32.mrb[9].mxu0  ;;  %v983_v51 = vsel %vm783_vm3, %v968_v49, -inf }
 0x44f   : > { %984 = vmax.xlane.f32.xlu1 %v983_v51  ;;  %v971_v52 = vpop.f32.mrb[10].mxu0 }
 0x450   : > { %v2688_v53 = vpop.f32.mrb[11].mxu0 }
 0x460   : > { %1071 = vrot.lane.b32.xlu1 %v776_v24, %s3949_s2 }
 0x461   : > { %1022 = vrot.lane.b32.xlu0 %v3591_v21, %s3949_s2 }
 0x465   : > { %v976_v54 = vpop.xlane.xlu1 %975 }
 0x466   : > { %v986_v55 = vsub.f32 %v824_v34, %v976_v54 }
 0x468   : > { %v990_v56 = vmul.f32 1.442695, %v986_v55 }
 0x46a   : > { %2948 = vpow2.f32 %v990_v56 }
 0x474   : > { %v2949_v57 = vpop.eup %2948 }
 0x475   : > { %v998_v58 = vsel %vm783_vm3, %v2949_v57, 0.0 }
 0x480   : > { %999 = vadd.xlane.f32.xlu0 %v998_v58 }
 0x4d4   : > { %v979_v59 = vpop.xlane.xlu0 %978 }
 0x4d5   : > { %v987_v60 = vsub.f32 %v872_v39, %v979_v59 }
 0x4d7   : > { %v992_v61 = vmul.f32 1.442695, %v987_v60 }
 0x4d8   : > { %v982_v62 = vpop.xlane.xlu0 %981 }
 0x4d9   : > { %2950 = vpow2.f32 %v992_v61  ;;  %v988_v63 = vsub.f32 %v920_v44, %v982_v62  ;;  %v2513_v61 = vld [vmem:[#allocation7] ss:$0 sm:$0xff] }
 0x4db   : > { %v994_v1 = vmul.f32 1.442695, %v988_v63 }
 0x4dc   : > { %v1023_v2 = vpop.permute.xlu0 %1022  ;;  %v985_v3 = vpop.xlane.xlu1 %984 }
 0x4dd   : > { %2952 = vpow2.f32 %v994_v1  ;;  %v1029_v4 = vsel %vm1027_vm4, %v1023_v2, 0  ;;  %v989_v5 = vsub.f32 %v968_v49, %v985_v3 }
 0x4de   : > { %2690 = vmatpush3.bf16.msra.mxu1 %v1029_v4 }
 0x4df   : > { %v996_v6 = vmul.f32 1.442695, %v989_v5  ;;  %2701 = vmatprep.subr.bf16.mxu1 %v3215_v0 }
 0x4e0   : > { %v1072_v7 = vpop.permute.xlu1 %1071 }
 0x4e1   : > { %2954 = vpow2.f32 %v996_v6  ;;  %v1077_v8 = vsel %vm1027_vm4, %v1072_v7, 0 }
 0x4e2   : > { %2696 = vmatpush3.bf16.msra.mxu0 %v1077_v8 }
 0x4e3   : > { %v2951_v9 = vpop.eup %2950  ;;  %2707 = vmatprep.subr.bf16.mxu0 %v3215_v0 }
 0x4e4   : > { %v1001_v10 = vsel %vm783_vm3, %v2951_v9, 0.0 }
 0x4e5   : > { %1002 = vadd.xlane.f32.xlu1 %v1001_v10 }
 0x4e7   : > { %v2953_v12 = vpop.eup %2952 }
 0x4e8   : > { %v1004_v13 = vsel %vm783_vm3, %v2953_v12, 0.0 }
 0x4e9   : > { %1005 = vadd.xlane.f32.xlu0 %v1004_v13  ;;  %v2935_v13 = vld [vmem:[%s3926_s7 + $0x8] sm:$0xff]  }
 0x4eb   : > { %v2955_v14 = vpop.eup %2954 }
 0x4ec   : > { %v1007_v15 = vsel %vm783_vm3, %v2955_v14, 0.0 }
 0x4ed   : > { %1008 = vadd.xlane.f32.xlu1 %v1007_v15 }
 0x4fe   : > { %1119 = vrot.lane.b32.xlu1 %v3604_v26, %s3949_s2 }
 0x4ff   : > { %1167 = vrot.lane.b32.xlu0 %v3601_v23, %s3949_s2  ;;  %s3984_s2 = sld [smem:[#allocation23_spill]] }
 0x50d   : > { %v1000_v16 = vpop.xlane.xlu0 %999 }
 0x50e   : > { %2956 = vrcp.f32 %v1000_v16 }
 0x518   : > { %v2957_v17 = vpop.eup %2956 }
 0x519   : > { %v1014_v18 = vmul.f32 %v2957_v17, %v2949_v57  ;;  %v2517_v17 = vld [vmem:[%s3930_s11] ss:$0 sm:$0xff] }
 0x51b   : > { %v1018_v19 = vpack.c.bf16 %v1014_v18, %v1014_v18 }
 0x51d   : > { %2692 = vmatmul.mubr.msk.bf16.vlgmr.msra.gmra.mrb[12].mxu1 %vm783_vm3, %v1018_v19  ;;  %v2518_v19 = vld [vmem:[%s3931_s12] ss:$0 sm:$0xff] }
 0x51e   : > { %2703 = vmatprep.mubr.msk.bf16.mxu1 %vm3216_vm0, %v3215_v0 }
 0x572   : > { %v1003_v20 = vpop.xlane.xlu1 %1002 }
 0x573   : > { %2958 = vrcp.f32 %v1003_v20 }
 0x576   : > { %v1006_v21 = vpop.xlane.xlu0 %1005 }
 0x577   : > { %2960 = vrcp.f32 %v1006_v21 }
 0x57a   : > { %v1009_v22 = vpop.xlane.xlu1 %1008  ;;  %v1168_v23 = vpop.permute.xlu0 %1167 }
 0x57b   : > { %2962 = vrcp.f32 %v1009_v22  ;;  %v1173_v31 = vsel %vm1027_vm4, %v1168_v23, 0 }
 0x57d   : > { %v2959_v24 = vpop.eup %2958 }
 0x57e   : > { %v1015_v25 = vmul.f32 %v2959_v24, %v2951_v9  ;;  %v1120_v26 = vpop.permute.xlu1 %1119  ;;  %v2936_v24 = vld [vmem:[#allocation10] sm:$0xff]  }
 0x57f   : > { %v1125_v27 = vsel %vm1027_vm4, %v1120_v26, 0  ;;  %v2519_v26 = vld [vmem:[#allocation8] ss:$0 sm:$0xff] }
 0x580   : > { %2702 = vmatpush3.bf16.msra.mxu1 %v1125_v27  ;;  %v1019_v28 = vpack.c.bf16 %v1015_v25, %v1015_v25  ;;  %v2937_v25 = vld [vmem:[#allocation10 + $0x8] sm:$0xff]  }
 0x581   : > { %v2961_v29 = vpop.eup %2960  ;;  %2713 = vmatprep.subr.bf16.mxu1 %v3215_v0 }
 0x582   : > { %v1016_v30 = vmul.f32 %v2961_v29, %v2953_v12  ;;  %2698 = vmatmul.mubr.msk.bf16.vlgmr.msra.gmra.mrb[12].mxu0 %vm783_vm3, %v1019_v28  ;;  %v2934_v12 = vld [vmem:[%s3926_s7] sm:$0xff]  }
 0x583   : > { %2708 = vmatpush3.bf16.msra.mxu0 %v1173_v31  ;;  %2709 = vmatprep.mubr.msk.bf16.mxu0 %vm3216_vm0, %v3215_v0 }
 0x584   : > { %v1020_v32 = vpack.c.bf16 %v1016_v30, %v1016_v30  ;;  %2721 = vmatprep.subr.bf16.mxu0 %v3215_v0 }
 0x585   : > { %v2963_v33 = vpop.eup %2962 }
 0x586   : > { %v1017_v34 = vmul.f32 %v2963_v33, %v2955_v14  ;;  %2704 = vmatmul.mubr.msk.bf16.vlgmr.msra.gmra.mrb[16].mxu1 %vm783_vm3, %v1020_v32  ;;  %v2523_v33 = vld [vmem:[%s3929_s10] ss:$0 sm:$0xff] }
 0x587   : > { %2717 = vmatprep.mubr.msk.bf16.mxu1 %vm3216_vm0, %v3215_v0  ;;  %2714 = vmatpush3.bf16.msra.mxu1 %v2932_v40 }
 0x588   : > { %v1021_v35 = vpack.c.bf16 %v1017_v34, %v1017_v34  ;;  %2715 = vmatprep.subr.bf16.mxu1 %v3215_v0 }
 0x58a   : > { %2710 = vmatmul.mubr.msk.bf16.vlgmr.msra.gmra.mrb[16].mxu0 %vm783_vm3, %v1021_v35 }
 0x58b   : > { %2725 = vmatprep.mubr.msk.bf16.mxu0 %vm3216_vm0, %v3215_v0  ;;  %2716 = vmatpush3.bf16.msra.mxu1 %v2933_v41 }
 0x58c   : > { %2729 = vmatprep.subr.bf16.mxu1 %v3215_v0  ;;  %2722 = vmatpush3.bf16.msra.mxu0 %v2934_v12 }
 0x58d   : > { %2723 = vmatprep.subr.bf16.mxu0 %v3215_v0 }
 0x590   : > { %2724 = vmatpush3.bf16.msra.mxu0 %v2935_v13 }
 0x591   : > { %2737 = vmatprep.subr.bf16.mxu0 %v3215_v0 }
 0x5f0   : > { %v1065_v36 = vpop.f32.mrb[12].mxu1 }
 0x5f1   : > { %v2693_v37 = vpop.f32.mrb[13].mxu1 }
 0x5f2   : > { %v1068_v38 = vpop.f32.mrb[14].mxu1 }
 0x5f3   : > { %v2694_v39 = vpop.f32.mrb[15].mxu1 }
 0x655   : > { %v1113_v42 = vpop.f32.mrb[12].mxu0 }
 0x656   : > { %1216 = vrot.lane.b32.xlu1 %v1113_v42, %s3948_s6  ;;  %v2699_v43 = vpop.f32.mrb[13].mxu0  ;;  %s3983_s6 = sld [smem:[#allocation22_spill]] }
 0x657   : > { %v1116_v44 = vpop.f32.mrb[14].mxu0 }
 0x658   : > { %v2700_v45 = vpop.f32.mrb[15].mxu0 }
 0x659   : > { %v1161_v46 = vpop.f32.mrb[16].mxu1 }
 0x65a   : > { %1220 = vrot.lane.b32.xlu0 %v1161_v46, %s3947_s8  ;;  %v2705_v47 = vpop.f32.mrb[17].mxu1  ;;  %v2938_v46 = vld [vmem:[%s3922_s3 + $0x10] sm:$0xff]  }
 0x65b   : > { %v1164_v48 = vpop.f32.mrb[18].mxu1  ;;  %v2939_v47 = vld [vmem:[%s3922_s3 + $0x18] sm:$0xff]  }
 0x65c   : > { %v2706_v49 = vpop.f32.mrb[19].mxu1 }
 0x65d   : > { %v1209_v50 = vpop.f32.mrb[16].mxu0 }
 0x65e   : > { %1224 = vrot.lane.b32.xlu1 %v1209_v50, %s3946_s30  ;;  %v2711_v51 = vpop.f32.mrb[17].mxu0  ;;  %s3986_s30 = smov 8  }
 0x65f   : > { %v1212_v52 = vpop.f32.mrb[18].mxu0 }
 0x660   : > { %v2712_v53 = vpop.f32.mrb[19].mxu0  ;;  %v2527_v52 = vld [vmem:[%s3983_s6] ss:$0 sm:$0xff] }
 0x6c8   : > { %v1217_v54 = vpop.permute.xlu1 %1216 }
 0x6c9   : > { %v1227_v56 = vsel %vm783_vm3, %v1065_v36, %v1217_v54  ;;  %v2528_v54 = vld [vmem:[%s3984_s2] ss:$0 sm:$0xff] }
 0x6cc   : > { %v1221_v55 = vpop.permute.xlu0 %1220 }
 0x6cd   : > { %v1229_v57 = vsel %vm1228_vm5, %v1227_v56, %v1221_v55 }
 0x6d0   : > { %v1225_v58 = vpop.permute.xlu1 %1224 }
 0x6d1   : > { %v1231_v59 = vsel %vm1230_vm6, %v1229_v57, %v1225_v58  ;;  %v2534_v58 = vld [vmem:[%s3923_s4 + $0x1] ss:$0 sm:$0xff] }
 0x6d2   : > { %v1232_v60 = vpack.c.bf16 %v1231_v59, %v1231_v59 }
 0x6d4   : > { %2718 = vmatmul.mubr.msk.bf16.vlgmr.msra.gmra.mrb[20].mxu1 %vm729_vm2, %v1232_v60 }
 0x6d5   : > { %2733 = vmatprep.mubr.msk.bf16.mxu1 %vm3216_vm0, %v3215_v0  ;;  %2730 = vmatpush3.bf16.msra.mxu1 %v2936_v24 }
 0x6d6   : > { %2731 = vmatprep.subr.bf16.mxu1 %v3215_v0 }
 0x6d9   : > { %2732 = vmatpush3.bf16.msra.mxu1 %v2937_v25 }
 0x6da   : > { %2745 = vmatprep.subr.bf16.mxu1 %v3215_v0 }
 0x7a7   : > { %v1293_v62 = vpop.f32.mrb[20].mxu1 }
 0x7a8   : > { %v1294_v63 = vadd.f32 %v2513_v61, %v1293_v62  ;;  %v2719_v1 = vpop.f32.mrb[21].mxu1 }
 0x7a9   : > { %v1296_v2 = vpop.f32.mrb[22].mxu1 }
 0x7aa   : > { %v2720_v3 = vpop.f32.mrb[23].mxu1  ;;  %v1299_v4 = vadd.f32 %v1294_v63, %v3581_v11 }
 0x7ac   : > { %v1302_v5 = vsel %vm729_vm2, %v1299_v4, 0.0 }
 0x7ad   : > { %1303 = vadd.xlane.f32.xlu0 %v1302_v5 }
 0x83a   : > { %v1304_v6 = vpop.xlane.xlu0 %1303 }
 0x83b   : > { %v1306_v7 = vmul.f32 0.03125, %v1304_v6 }
 0x83d   : > { %v1307_v8 = vsub.f32 %v1299_v4, %v1306_v7 }
 0x83f   : > { %v1308_v9 = vmul.f32 %v1307_v8, %v1307_v8 }
 0x841   : > { %v1309_v10 = vsel %vm729_vm2, %v1308_v9, 0.0 }
 0x842   : > { %1310 = vadd.xlane.f32.xlu1 %v1309_v10 }
 0x8cf   : > { %v1311_v11 = vpop.xlane.xlu1 %1310 }
 0x8d0   : > { %v1312_v14 = vmul.f32 0.03125, %v1311_v11 }
 0x8d2   : > { %v1313_v15 = vadd.f32 1e-05, %v1312_v14 }
 0x8d4   : > { %2964 = vrsqrt.f32 %v1313_v15 }
 0x8de   : > { %v2965_v16 = vpop.eup %2964 }
 0x8df   : > { %v1315_v18 = vmul.f32 %v2965_v16, %v1307_v8 }
 0x8e1   : > { %v1322_v20 = vmul.f32 %v2517_v17, %v1315_v18 }
 0x8e3   : > { %v1329_v21 = vadd.f32 %v2518_v19, %v1322_v20 }
 0x8e5   : > { %v1330_v22 = vpack.c.bf16 %v1329_v21, %v1329_v21 }
 0x8e7   : > { %2726 = vmatmul.mubr.msk.bf16.vlgmr.msra.gmra.mrb[20].mxu0 %vm729_vm2, %v1330_v22 }
 0x8e8   : > { %2741 = vmatprep.mubr.msk.bf16.mxu0 %vm3216_vm0, %v3215_v0  ;;  %2738 = vmatpush3.bf16.msra.mxu0 %v2938_v46 }
 0x8e9   : > { %2739 = vmatprep.subr.bf16.mxu0 %v3215_v0 }
 0x8ec   : > { %2740 = vmatpush3.bf16.msra.mxu0 %v2939_v47 }
 0x8ed   : > { %2751 = vmatprep.subr.bf16.mxu0 %v3215_v0 }
 0x9ba   : > { %v1391_v23 = vpop.f32.mrb[20].mxu0 }
 0x9bb   : > { %v1392_v27 = vadd.f32 %v2519_v26, %v1391_v23  ;;  %v2727_v28 = vpop.f32.mrb[21].mxu0 }
 0x9bc   : > { %v1394_v29 = vpop.f32.mrb[22].mxu0 }
 0x9bd   : > { %v1397_v30 = vmax.f32 %v1392_v27, 0.0  ;;  %v2728_v31 = vpop.f32.mrb[23].mxu0 }
 0x9bf   : > { %v1398_v32 = vpack.c.bf16 %v1397_v30, %v1397_v30 }
 0x9c1   : > { %2734 = vmatmul.mubr.msk.bf16.vlgmr.msra.gmra.mrb[24].mxu1 %vm729_vm2, %v1398_v32 }
 0x9c2   : > { %2747 = vmatprep.mubr.msk.bf16.mxu1 %vm3216_vm0, %v3215_v0 }
 0xa94   : > { %v1459_v34 = vpop.f32.mrb[24].mxu1 }
 0xa95   : > { %v1460_v35 = vadd.f32 %v2523_v33, %v1459_v34  ;;  %v2735_v36 = vpop.f32.mrb[25].mxu1 }
 0xa96   : > { %v1462_v37 = vpop.f32.mrb[26].mxu1 }
 0xa97   : > { %v2736_v38 = vpop.f32.mrb[27].mxu1  ;;  %v1465_v39 = vadd.f32 %v1460_v35, %v1329_v21 }
 0xa99   : > { %v1468_v40 = vsel %vm729_vm2, %v1465_v39, 0.0 }
 0xa9a   : > { %1469 = vadd.xlane.f32.xlu0 %v1468_v40 }
 0xb27   : > { %v1470_v41 = vpop.xlane.xlu0 %1469 }
 0xb28   : > { %v1471_v42 = vmul.f32 0.03125, %v1470_v41 }
 0xb2a   : > { %v1472_v43 = vsub.f32 %v1465_v39, %v1471_v42 }
 0xb2c   : > { %v1473_v44 = vmul.f32 %v1472_v43, %v1472_v43 }
 0xb2e   : > { %v1474_v45 = vsel %vm729_vm2, %v1473_v44, 0.0 }
 0xb2f   : > { %1475 = vadd.xlane.f32.xlu0 %v1474_v45 }
 0xbbc   : > { %v1476_v48 = vpop.xlane.xlu0 %1475 }
 0xbbd   : > { %v1477_v49 = vmul.f32 0.03125, %v1476_v48 }
 0xbbf   : > { %v1478_v50 = vadd.f32 1e-05, %v1477_v49 }
 0xbc1   : > { %2966 = vrsqrt.f32 %v1478_v50 }
 0xbcb   : > { %v2967_v51 = vpop.eup %2966 }
 0xbcc   : > { %v1480_v53 = vmul.f32 %v2967_v51, %v1472_v43 }
 0xbce   : > { %v1487_v55 = vmul.f32 %v2527_v52, %v1480_v53 }
 0xbd0   : > { %v3729_v56 = vadd.f32 %v2528_v54, %v1487_v55 }
 0xbd2   : > { %v1495_v57 = vpack.c.bf16 %v3729_v56, %v3729_v56 }
 0xbd4   : > { %2742 = vmatmul.mubr.msk.bf16.vlgmr.msra.gmra.mrb[24].mxu0 %vm729_vm2, %v1495_v57 }
 0xbd5   : > { %2753 = vmatprep.mubr.msk.bf16.mxu0 %vm3216_vm0, %v3215_v0 }
 0xca7   : > { %v1558_v59 = vpop.f32.mrb[24].mxu0 }
 0xca8   : > { %v1559_v60 = vadd.f32 %v2534_v58, %v1558_v59  ;;  %v2743_v61 = vpop.f32.mrb[25].mxu0 }
 0xca9   : > { %v1561_v62 = vpop.f32.mrb[26].mxu0 }
 0xcaa   : > { %v1564_v63 = vpack.c.bf16 %v1559_v60, %v1559_v60  ;;  %v2744_v1 = vpop.f32.mrb[27].mxu0 }
 0xcac   : > { %1568 = vrot.lane.b32.xlu0 %v1564_v63, %s3220_s16  ;;  %1566 = vrot.lane.b32.xlu1 %v1564_v63, %s3218_s22  ;;  %s2578_s22 = sshll.u32 %s3337_s0, 4  ;;  %s2364_s0 = scalar_lea.sflag [#allocation4], %s3533_s9 }
 0xcb0   : > { %1570 = vrot.lane.b32.xlu1 %v1564_v63, %s3217_s14  ;;  %s3985_s14 = smov 64  }
 0xcb4   : > { %1572 = vrot.lane.b32.xlu1 %v1564_v63, %s3219_s28 }
 0xd1e   : > { %v3743_v2 = vpop.permute.xlu0 %1568  ;;  %v1567_v3 = vpop.permute.xlu1 %1566 }
 0xd1f   : > { %1668 = vrot.lane.b32.xlu1 %v3743_v2, %s3219_s28  ;;  %1620 = vrot.lane.b32.xlu0 %v1567_v3, %s3219_s28 }
 0xd22   : > { %v3748_v4 = vpop.permute.xlu1 %1570 }
 0xd23   : > { %1716 = vrot.lane.b32.xlu0 %v3748_v4, %s3219_s28  ;;  %s618_s28 = scalar_lea.vmem [#allocation11], %s3533_s9 }
 0xd24   : > { %s2376_s16 = sshll.u32 %s618_s28, 4  ;;  %s3877_s16 = int_to_ptr.vmem [resolvable:$true] %s2376_s16 }
 0xd26   : > { %v1573_v5 = vpop.permute.xlu1 %1572 }
 0xd27   : > { %v1578_v6 = vsel %vm783_vm3, %v1573_v5, 0 }
 0xd28   : > { %2746 = vmatpush3.bf16.xpose.msra.mxu1 %v1578_v6 }
 0xd29   : > { %2757 = vmatprep.subr.bf16.mxu1 %v3215_v0 }
 0xd2f   : > { %2748 = vmatmul.mubr.msk.bf16.vlgmr.msra.gmra.mrb[28].mxu1 %vm783_vm3, %v1564_v63 }
 0xd30   : > { %2759 = vmatprep.mubr.msk.bf16.mxu1 %vm3216_vm0, %v3215_v0 }
 0xd91   : > { %v1621_v7 = vpop.permute.xlu0 %1620  ;;  %v1669_v8 = vpop.permute.xlu1 %1668 }
 0xd92   : > { %v1626_v9 = vsel %vm783_vm3, %v1621_v7, 0  ;;  %v1674_v10 = vsel %vm783_vm3, %v1669_v8, 0 }
 0xd93   : > { %2752 = vmatpush3.bf16.xpose.msra.mxu0 %v1626_v9  ;;  %2758 = vmatpush3.bf16.xpose.msra.mxu1 %v1674_v10 }
 0xd94   : > { %2763 = vmatprep.subr.bf16.mxu0 %v3215_v0  ;;  %2769 = vmatprep.subr.bf16.mxu1 %v3215_v0 }
 0xd95   : > { %v1717_v12 = vpop.permute.xlu0 %1716 }
 0xd96   : > { %v1722_v13 = vsel %vm783_vm3, %v1717_v12, 0 }
 0xd9a   : > { %2754 = vmatmul.mubr.msk.bf16.vlgmr.msra.gmra.mrb[28].mxu0 %vm783_vm3, %v1567_v3  ;;  %2760 = vmatmul.mubr.msk.bf16.vlgmr.msra.gmra.mrb[32].mxu1 %vm783_vm3, %v3743_v2 }
 0xd9b   : > { %2764 = vmatpush3.bf16.xpose.msra.mxu0 %v1722_v13  ;;  %2765 = vmatprep.mubr.msk.bf16.mxu0 %vm3216_vm0, %v3215_v0 }
 0xd9c   : > { %2775 = vmatprep.subr.bf16.mxu0 %v3215_v0  ;;  %2771 = vmatprep.mubr.msk.bf16.mxu1 %vm3216_vm0, %v3215_v0 }
 0xda2   : > { %2766 = vmatmul.mubr.msk.bf16.vlgmr.msra.gmra.mrb[32].mxu0 %vm783_vm3, %v3748_v4 }
 0xda3   : > { %2777 = vmatprep.mubr.msk.bf16.mxu0 %vm3216_vm0, %v3215_v0 }
 0xe02   : > { %v1614_v11 = vpop.f32.mrb[28].mxu1 }
 0xe03   : > { %v2749_v14 = vpop.f32.mrb[29].mxu1  ;;  %v1764_v15 = vsel %vm783_vm3, %v1614_v11, -inf }
 0xe04   : > { %1765 = vmax.xlane.f32.xlu1 %v1764_v15  ;;  %v1617_v16 = vpop.f32.mrb[30].mxu1 }
 0xe05   : > { %v2750_v17 = vpop.f32.mrb[31].mxu1 }
 0xe6d   : > { %v1662_v18 = vpop.f32.mrb[28].mxu0  ;;  %v1710_v19 = vpop.f32.mrb[32].mxu1 }
 0xe6e   : > { %v2755_v20 = vpop.f32.mrb[29].mxu0  ;;  %v2761_v21 = vpop.f32.mrb[33].mxu1  ;;  %v1767_v22 = vsel %vm783_vm3, %v1662_v18, -inf  ;;  %v1770_v27 = vsel %vm783_vm3, %v1710_v19, -inf }
 0xe6f   : > { %v1713_v24 = vpop.f32.mrb[34].mxu1  ;;  %1768 = vmax.xlane.f32.xlu0 %v1767_v22  ;;  %v1665_v25 = vpop.f32.mrb[30].mxu0  ;;  %v2941_v20 = vld [vmem:[%s3924_s5 + $0x18] sm:$0xff]  }
 0xe70   : > { %v2756_v26 = vpop.f32.mrb[31].mxu0  ;;  %v2762_v23 = vpop.f32.mrb[35].mxu1 }
 0xe73   : > { %1771 = vmax.xlane.f32.xlu0 %v1770_v27 }
 0xe75   : > { %v1758_v28 = vpop.f32.mrb[32].mxu0 }
 0xe76   : > { %v2767_v29 = vpop.f32.mrb[33].mxu0  ;;  %v1773_v30 = vsel %vm783_vm3, %v1758_v28, -inf }
 0xe77   : > { %1774 = vmax.xlane.f32.xlu1 %v1773_v30  ;;  %v1761_v31 = vpop.f32.mrb[34].mxu0 }
 0xe78   : > { %v2768_v32 = vpop.f32.mrb[35].mxu0 }
 0xe88   : > { %1860 = vrot.lane.b32.xlu1 %v1567_v3, %s3985_s14 }
 0xe89   : > { %1812 = vrot.lane.b32.xlu0 %v1564_v63, %s3985_s14 }
 0xe91   : > { %v1766_v33 = vpop.xlane.xlu1 %1765 }
 0xe92   : > { %v1776_v34 = vsub.f32 %v1614_v11, %v1766_v33 }
 0xe94   : > { %v1780_v35 = vmul.f32 1.442695, %v1776_v34 }
 0xe96   : > { %2968 = vpow2.f32 %v1780_v35 }
 0xea0   : > { %v2969_v36 = vpop.eup %2968 }
 0xea1   : > { %v1788_v37 = vsel %vm783_vm3, %v2969_v36, 0.0 }
 0xea8   : > { %1789 = vadd.xlane.f32.xlu0 %v1788_v37 }
 0xefc   : > { %v1769_v38 = vpop.xlane.xlu0 %1768 }
 0xefd   : > { %v1777_v39 = vsub.f32 %v1662_v18, %v1769_v38 }
 0xeff   : > { %v1782_v40 = vmul.f32 1.442695, %v1777_v39 }
 0xf00   : > { %v1772_v41 = vpop.xlane.xlu0 %1771 }
 0xf01   : > { %2970 = vpow2.f32 %v1782_v40  ;;  %v1778_v42 = vsub.f32 %v1710_v19, %v1772_v41  ;;  %v2940_v19 = vld [vmem:[%s3924_s5 + $0x10] sm:$0xff]  }
 0xf02   : > { %v2550_v40 = vld [vmem:[#allocation7 + $0x1] ss:$0 sm:$0xff] }
 0xf03   : > { %v1784_v43 = vmul.f32 1.442695, %v1778_v42 }
 0xf04   : > { %v1813_v44 = vpop.permute.xlu0 %1812  ;;  %v1775_v45 = vpop.xlane.xlu1 %1774 }
 0xf05   : > { %2972 = vpow2.f32 %v1784_v43  ;;  %v1818_v46 = vsel %vm1027_vm4, %v1813_v44, 0  ;;  %v1779_v47 = vsub.f32 %v1758_v28, %v1775_v45 }
 0xf06   : > { %2770 = vmatpush3.bf16.msra.mxu1 %v1818_v46 }
 0xf07   : > { %v1786_v48 = vmul.f32 1.442695, %v1779_v47  ;;  %2781 = vmatprep.subr.bf16.mxu1 %v3215_v0 }
 0xf08   : > { %v1861_v49 = vpop.permute.xlu1 %1860 }
 0xf09   : > { %2974 = vpow2.f32 %v1786_v48  ;;  %v1866_v50 = vsel %vm1027_vm4, %v1861_v49, 0 }
 0xf0a   : > { %2776 = vmatpush3.bf16.msra.mxu0 %v1866_v50 }
 0xf0b   : > { %v2971_v51 = vpop.eup %2970  ;;  %2787 = vmatprep.subr.bf16.mxu0 %v3215_v0 }
 0xf0c   : > { %v1791_v52 = vsel %vm783_vm3, %v2971_v51, 0.0 }
 0xf0d   : > { %1792 = vadd.xlane.f32.xlu1 %v1791_v52 }
 0xf0f   : > { %v2973_v53 = vpop.eup %2972 }
 0xf10   : > { %v1794_v54 = vsel %vm783_vm3, %v2973_v53, 0.0 }
 0xf11   : > { %1795 = vadd.xlane.f32.xlu0 %v1794_v54  ;;  %v2943_v54 = vld [vmem:[%s3926_s7 + $0x18] sm:$0xff]  }
 0xf13   : > { %v2975_v55 = vpop.eup %2974 }
 0xf14   : > { %v1797_v57 = vsel %vm783_vm3, %v2975_v55, 0.0 }
 0xf15   : > { %1798 = vadd.xlane.f32.xlu1 %v1797_v57 }
 0xf26   : > { %1908 = vrot.lane.b32.xlu1 %v3743_v2, %s3985_s14 }
 0xf27   : > { %1956 = vrot.lane.b32.xlu0 %v3748_v4, %s3985_s14  ;;  %s3989_s14 = sld [smem:[#allocation24_spill]] }
 0xf35   : > { %v1790_v58 = vpop.xlane.xlu0 %1789 }
 0xf36   : > { %2976 = vrcp.f32 %v1790_v58 }
 0xf40   : > { %v2977_v59 = vpop.eup %2976 }
 0xf41   : > { %v1804_v60 = vmul.f32 %v2977_v59, %v2969_v36  ;;  %v2556_v59 = vld [vmem:[%s3930_s11 + $0x1] ss:$0 sm:$0xff] }
 0xf43   : > { %v1808_v61 = vpack.c.bf16 %v1804_v60, %v1804_v60 }
 0xf45   : > { %2772 = vmatmul.mubr.msk.bf16.vlgmr.msra.gmra.mrb[36].mxu1 %vm783_vm3, %v1808_v61  ;;  %v2557_v61 = vld [vmem:[%s3931_s12 + $0x1] ss:$0 sm:$0xff] }
 0xf46   : > { %2783 = vmatprep.mubr.msk.bf16.mxu1 %vm3216_vm0, %v3215_v0 }
 0xf9a   : > { %v1793_v62 = vpop.xlane.xlu1 %1792 }
 0xf9b   : > { %2978 = vrcp.f32 %v1793_v62 }
 0xf9e   : > { %v1796_v63 = vpop.xlane.xlu0 %1795 }
 0xf9f   : > { %2980 = vrcp.f32 %v1796_v63 }
 0xfa2   : > { %v1799_v1 = vpop.xlane.xlu1 %1798  ;;  %v1957_v4 = vpop.permute.xlu0 %1956 }
 0xfa3   : > { %2982 = vrcp.f32 %v1799_v1  ;;  %v1962_v10 = vsel %vm1027_vm4, %v1957_v4, 0 }
 0xfa5   : > { %v2979_v2 = vpop.eup %2978 }
 0xfa6   : > { %v1805_v3 = vmul.f32 %v2979_v2, %v2971_v51  ;;  %v1909_v5 = vpop.permute.xlu1 %1908  ;;  %v2944_v2 = vld [vmem:[#allocation10 + $0x10] sm:$0xff]  }
 0xfa7   : > { %v1914_v6 = vsel %vm1027_vm4, %v1909_v5, 0  ;;  %v2562_v5 = vld [vmem:[#allocation8 + $0x1] ss:$0 sm:$0xff] }
 0xfa8   : > { %2782 = vmatpush3.bf16.msra.mxu1 %v1914_v6  ;;  %v1809_v7 = vpack.c.bf16 %v1805_v3, %v1805_v3  ;;  %v2945_v3 = vld [vmem:[#allocation10 + $0x18] sm:$0xff]  }
 0xfa9   : > { %v2981_v8 = vpop.eup %2980  ;;  %2793 = vmatprep.subr.bf16.mxu1 %v3215_v0 }
 0xfaa   : > { %v1806_v9 = vmul.f32 %v2981_v8, %v2973_v53  ;;  %2778 = vmatmul.mubr.msk.bf16.vlgmr.msra.gmra.mrb[36].mxu0 %vm783_vm3, %v1809_v7  ;;  %v2942_v53 = vld [vmem:[%s3926_s7 + $0x10] sm:$0xff]  }
 0xfab   : > { %2788 = vmatpush3.bf16.msra.mxu0 %v1962_v10  ;;  %2789 = vmatprep.mubr.msk.bf16.mxu0 %vm3216_vm0, %v3215_v0 }
 0xfac   : > { %v1810_v12 = vpack.c.bf16 %v1806_v9, %v1806_v9  ;;  %2801 = vmatprep.subr.bf16.mxu0 %v3215_v0 }
 0xfad   : > { %v2983_v13 = vpop.eup %2982 }
 0xfae   : > { %v1807_v11 = vmul.f32 %v2983_v13, %v2975_v55  ;;  %2784 = vmatmul.mubr.msk.bf16.vlgmr.msra.gmra.mrb[40].mxu1 %vm783_vm3, %v1810_v12  ;;  %v2567_v13 = vld [vmem:[%s3929_s10 + $0x1] ss:$0 sm:$0xff] }
 0xfaf   : > { %2797 = vmatprep.mubr.msk.bf16.mxu1 %vm3216_vm0, %v3215_v0  ;;  %2794 = vmatpush3.bf16.msra.mxu1 %v2940_v19 }
 0xfb0   : > { %v1811_v14 = vpack.c.bf16 %v1807_v11, %v1807_v11  ;;  %2795 = vmatprep.subr.bf16.mxu1 %v3215_v0 }
 0xfb2   : > { %2790 = vmatmul.mubr.msk.bf16.vlgmr.msra.gmra.mrb[40].mxu0 %vm783_vm3, %v1811_v14 }
 0xfb3   : > { %2805 = vmatprep.mubr.msk.bf16.mxu0 %vm3216_vm0, %v3215_v0  ;;  %2796 = vmatpush3.bf16.msra.mxu1 %v2941_v20 }
 0xfb4   : > { %2809 = vmatprep.subr.bf16.mxu1 %v3215_v0  ;;  %2802 = vmatpush3.bf16.msra.mxu0 %v2942_v53 }
 0xfb5   : > { %2803 = vmatprep.subr.bf16.mxu0 %v3215_v0 }
 0xfb8   : > { %2804 = vmatpush3.bf16.msra.mxu0 %v2943_v54 }
 0xfb9   : > { %2817 = vmatprep.subr.bf16.mxu0 %v3215_v0 }
0x1018   : > { %v1854_v15 = vpop.f32.mrb[36].mxu1 }
0x1019   : > { %v2773_v16 = vpop.f32.mrb[37].mxu1 }
0x101a   : > { %v1857_v17 = vpop.f32.mrb[38].mxu1 }
0x101b   : > { %v2774_v18 = vpop.f32.mrb[39].mxu1 }
0x107d   : > { %v1902_v21 = vpop.f32.mrb[36].mxu0 }
0x107e   : > { %2005 = vrot.lane.b32.xlu1 %v1902_v21, %s3986_s30  ;;  %v2779_v22 = vpop.f32.mrb[37].mxu0 }
0x107f   : > { %v1905_v24 = vpop.f32.mrb[38].mxu0 }
0x1080   : > { %v2780_v25 = vpop.f32.mrb[39].mxu0 }
0x1081   : > { %v1950_v26 = vpop.f32.mrb[40].mxu1 }
0x1082   : > { %2009 = vrot.lane.b32.xlu0 %v1950_v26, %s3987_s13  ;;  %v2785_v23 = vpop.f32.mrb[41].mxu1  ;;  %v2946_v26 = vld [vmem:[%s3989_s14] sm:$0xff]   ;;  %s3991_s13 = sld [smem:[#allocation26_spill]] }
0x1083   : > { %v1953_v27 = vpop.f32.mrb[42].mxu1  ;;  %v2947_v23 = vld [vmem:[%s3989_s14 + $0x8] sm:$0xff]  }
0x1084   : > { %v2786_v28 = vpop.f32.mrb[43].mxu1 }
0x1085   : > { %v1998_v29 = vpop.f32.mrb[40].mxu0 }
0x1086   : > { %2013 = vrot.lane.b32.xlu1 %v1998_v29, %s3988_s1  ;;  %v2791_v30 = vpop.f32.mrb[41].mxu0  ;;  %s3130_s1 = scalar_lea.vmem %s3877_s16, 16 }
0x1087   : > { %v2001_v31 = vpop.f32.mrb[42].mxu0  ;;  %p3131_p6 = scmp.ne.s32.totalorder %s3877_s16, %s3130_s1 }
0x1088   : > { %v2792_v32 = vpop.f32.mrb[43].mxu0  ;;  %v2573_v31 = vld [vmem:[%s3983_s6 + $0x1] ss:$0 sm:$0xff] }
0x1089   : > { %p3132_p7 = pnand %p3131_p6, %p3992_p5 }
0x108b   : > { %p3133_p9 = pneg %p3132_p7 }
0x10f0   : > { %v2006_v33 = vpop.permute.xlu1 %2005 }
0x10f1   : > { %v2016_v35 = vsel %vm783_vm3, %v1854_v15, %v2006_v33  ;;  %v2574_v33 = vld [vmem:[%s3984_s2 + $0x1] ss:$0 sm:$0xff]  ;;  %s3875_s2 = scalar_lea.hbm %s3991_s13, %s2578_s22 }
0x10f4   : > { %v2010_v34 = vpop.permute.xlu0 %2009 }
0x10f5   : > { %v2017_v36 = vsel %vm1228_vm5, %v2016_v35, %v2010_v34 }
0x10f8   : > { %v2014_v37 = vpop.permute.xlu1 %2013 }
0x10f9   : > { %v2018_v38 = vsel %vm1230_vm6, %v2017_v36, %v2014_v37 }
0x10fa   : > { %v2019_v39 = vpack.c.bf16 %v2018_v38, %v2018_v38 }
0x10fc   : > { %2798 = vmatmul.mubr.msk.bf16.vlgmr.msra.gmra.mrb[44].mxu1 %vm729_vm2, %v2019_v39 }
0x10fd   : > { %2813 = vmatprep.mubr.msk.bf16.mxu1 %vm3216_vm0, %v3215_v0  ;;  %2810 = vmatpush3.bf16.msra.mxu1 %v2944_v2 }
0x10fe   : > { %2811 = vmatprep.subr.bf16.mxu1 %v3215_v0 }
0x1101   : > { %2812 = vmatpush3.bf16.msra.mxu1 %v2945_v3 }
0x11cf   : > { %v2082_v41 = vpop.f32.mrb[44].mxu1 }
0x11d0   : > { %v2083_v42 = vadd.f32 %v2550_v40, %v2082_v41  ;;  %v2799_v43 = vpop.f32.mrb[45].mxu1 }
0x11d1   : > { %v2085_v44 = vpop.f32.mrb[46].mxu1 }
0x11d2   : > { %v2800_v45 = vpop.f32.mrb[47].mxu1  ;;  %v2088_v46 = vadd.f32 %v2083_v42, %v3729_v56  ;;  %v2305_v44 = vld [vmem:[%s3990_s21] sm:$0x1]  ;;  %s3134_s21 = sshll.u32 %s3225_s19, 4  ;;  %s3135_s21 = int_to_ptr.vmem [resolvable:$false] %s3134_s21 }
0x11d3   : > { %s3136_s8 = scalar_lea.vmem %s3135_s21, 32  ;;  %p3137_p4 = scmp.lt.s32.totalorder %s3877_s16, %s3135_s21 }
0x11d4   : > { %v2093_v47 = vsel %vm729_vm2, %v2088_v46, 0.0  ;;  %p3138_p3 = scmp.lt.s32.totalorder %s3136_s8, %s3130_s1 }
0x11d5   : > { %2094 = vadd.xlane.f32.xlu0 %v2093_v47 }
0x11d6   : > { %p3139_p13 = por %p3138_p3, %p3137_p4 }
0x11d8   : > { %p3140_p0 = pnand %p3139_p13, %p3133_p9 }
0x1262   : > { %v2095_v48 = vpop.xlane.xlu0 %2094 }
0x1263   : > { %v2096_v49 = vmul.f32 0.03125, %v2095_v48 }
0x1265   : > { %v2097_v50 = vsub.f32 %v2088_v46, %v2096_v49 }
0x1267   : > { %v2098_v51 = vmul.f32 %v2097_v50, %v2097_v50 }
0x1269   : > { %v2099_v52 = vsel %vm729_vm2, %v2098_v51, 0.0 }
0x126a   : > { %2100 = vadd.xlane.f32.xlu1 %v2099_v52 }
0x12f7   : > { %v2101_v56 = vpop.xlane.xlu1 %2100 }
0x12f8   : > { %v2102_v55 = vmul.f32 0.03125, %v2101_v56 }
0x12fa   : > { %v2103_v57 = vadd.f32 1e-05, %v2102_v55 }
0x12fc   : > { %2984 = vrsqrt.f32 %v2103_v57 }
0x1306   : > { %v2985_v58 = vpop.eup %2984 }
0x1307   : > { %v2105_v60 = vmul.f32 %v2985_v58, %v2097_v50 }
0x1309   : > { %v2112_v62 = vmul.f32 %v2556_v59, %v2105_v60 }
0x130b   : > { %v2119_v63 = vadd.f32 %v2557_v61, %v2112_v62 }
0x130d   : > { %v2120_v1 = vpack.c.bf16 %v2119_v63, %v2119_v63 }
0x130f   : > { %2806 = vmatmul.mubr.msk.bf16.vlgmr.msra.gmra.mrb[44].mxu0 %vm729_vm2, %v2120_v1 }
0x1310   : > { %2821 = vmatprep.mubr.msk.bf16.mxu0 %vm3216_vm0, %v3215_v0  ;;  %2818 = vmatpush3.bf16.msra.mxu0 %v2946_v26 }
0x1311   : > { %2819 = vmatprep.subr.bf16.mxu0 %v3215_v0 }
0x1314   : > { %2820 = vmatpush3.bf16.msra.mxu0 %v2947_v23 }
0x13e2   : > { %v2183_v4 = vpop.f32.mrb[44].mxu0 }
0x13e3   : > { %v2184_v6 = vadd.f32 %v2562_v5, %v2183_v4  ;;  %v2807_v7 = vpop.f32.mrb[45].mxu0 }
0x13e4   : > { %v2186_v8 = vpop.f32.mrb[46].mxu0 }
0x13e5   : > { %v2189_v9 = vmax.f32 %v2184_v6, 0.0  ;;  %v2808_v10 = vpop.f32.mrb[47].mxu0 }
0x13e7   : > { %v2190_v12 = vpack.c.bf16 %v2189_v9, %v2189_v9 }
0x13e9   : > { %2814 = vmatmul.mubr.msk.bf16.vlgmr.msra.gmra.mrb[48].mxu1 %vm729_vm2, %v2190_v12 }
0x14bc   : > { %v2253_v11 = vpop.f32.mrb[48].mxu1 }
0x14bd   : > { %v2254_v14 = vadd.f32 %v2567_v13, %v2253_v11  ;;  %v2815_v15 = vpop.f32.mrb[49].mxu1 }
0x14be   : > { %v2256_v16 = vpop.f32.mrb[50].mxu1 }
0x14bf   : > { %v2816_v17 = vpop.f32.mrb[51].mxu1  ;;  %v2259_v18 = vadd.f32 %v2254_v14, %v2119_v63 }
0x14c1   : > { %v2264_v19 = vsel %vm729_vm2, %v2259_v18, 0.0 }
0x14c2   : > { %2265 = vadd.xlane.f32.xlu0 %v2264_v19 }
0x154f   : > { %v2266_v20 = vpop.xlane.xlu0 %2265 }
0x1550   : > { %v2267_v21 = vmul.f32 0.03125, %v2266_v20 }
0x1552   : > { %v2268_v22 = vsub.f32 %v2259_v18, %v2267_v21 }
0x1554   : > { %v2269_v24 = vmul.f32 %v2268_v22, %v2268_v22 }
0x1556   : > { %v2270_v25 = vsel %vm729_vm2, %v2269_v24, 0.0 }
0x1557   : > { %2271 = vadd.xlane.f32.xlu0 %v2270_v25 }
0x15e4   : > { %v2272_v27 = vpop.xlane.xlu0 %2271 }
0x15e5   : > { %v2273_v28 = vmul.f32 0.03125, %v2272_v27 }
0x15e7   : > { %v2274_v29 = vadd.f32 1e-05, %v2273_v28 }
0x15e9   : > { %2986 = vrsqrt.f32 %v2274_v29 }
0x15f3   : > { %v2987_v30 = vpop.eup %2986 }
0x15f4   : > { %v2276_v32 = vmul.f32 %v2987_v30, %v2268_v22 }
0x15f6   : > { %v2283_v34 = vmul.f32 %v2573_v31, %v2276_v32 }
0x15f8   : > { %v2290_v35 = vadd.f32 %v2574_v33, %v2283_v34 }
0x15fa   : > { %v2291_v0 = vsel %vm729_vm2, %v2290_v35, 0.0 }
0x15fb   : > { %v2292_v36 = vrot.slane %v2291_v0, 4 }
0x15fd   : > { %v2293_v37 = vadd.f32 %v2292_v36, %v2291_v0 }
0x15ff   : > { %v2294_v38 = vrot.slane %v2293_v37, 2 }
0x1601   : > { %v2295_v39 = vadd.f32 %v2294_v38, %v2293_v37 }
0x1603   : > { %v2296_v40 = vrot.slane %v2295_v39, 1 }
0x1605   : > { %v2297_v41 = vadd.f32 %v2296_v40, %v2295_v39 }
0x1607   : > { %v2299_v42 = vmul.f32 0.125, %v2297_v41 }
0x1609   : > { %v2300_v43 = vpack.c.bf16 %v2299_v42, %v2299_v42 }
0x160b   : > { %2822 = vmatmul.mubr.msk.bf16.vlgmr.msra.gmra.mrb[48].mxu0 %vm729_vm2, %v2300_v43 }
0x16de   : > { %v2355_v45 = vpop.f32.mrb[48].mxu0 }
0x16df   : > { %v2356_v46 = vadd.f32 %v2355_v45, %v2305_v44  ;;  %v2823_v47 = vpop.f32.mrb[49].mxu0 }
0x16e0   : > { %v2358_v48 = vpop.f32.mrb[50].mxu0 }
0x16e1   : > { %v2824_v49 = vpop.f32.mrb[51].mxu0  ;;  %2362 = vst.msk [vmem:[%s618_s28] sm:$0x1] %vm2361_vm7, %v2356_v46 }
0x16e2   : > { %3143 = shalt.err (!%p3140_p0)
}
0x16e3   : > { %s3144_s9 = scalar_lea.hbm %s3875_s2, 16  ;;  %s3148_s30 = scalar_lea.hbm %s3991_s13, 32 }
0x16e4   : > { %p3145_p2 = scmp.ne.s32.totalorder %s3875_s2, %s3144_s9  ;;  %p3149_p11 = scmp.lt.u32.totalorder %s3875_s2, %s3991_s13 }
0x16e5   : > { %p3150_p12 = scmp.lt.u32.totalorder %s3148_s30, %s3144_s9  ;;  %p3152_p6 = scmp.lt.u32.totalorder %s3144_s9, %s3875_s2 }
0x16e6   : > { %p3146_p8 = pnand %p3145_p2, %p3992_p5 }
0x16e7   : > { %p3151_p1 = por %p3150_p12, %p3149_p11 }
0x16e8   : > { %p3147_p10 = pneg %p3146_p8 }
0x16e9   : > { %p3153_p7 = por %p3152_p6, %p3151_p1 }
0x16eb   : > { %p3154_p9 = pnand %p3153_p7, %p3147_p10 }
0x16ed   : > { %3157 = shalt.err (!%p3154_p9)
}
0x16ee   : > { %2843 = dma.vmem_to_hbm [thread:$0]  (%p3992_p5), %s3877_s16, 16, %s3875_s2, %s2364_s0  }
0x16ef PF: > { %s2388_s1 = sand.u32 1, %s3192_s24   ;;  %p3993_p4 = scmp.ne.s32.totalorder %s3974_s29, 0 }
0x16f0   : > { %p3994_p3 = scmp.ge.s32.totalorder %s3204_s27, 2  ;;  %s2389_s8 = scalar_lea.sflag [#allocation4], %s2388_s1 }
0x16f2   : > { %p2863_p13 = pnand %p3994_p3, %p3993_p4 }
0x16f4   : > { %3187 = dma.done.wait (!%p2863_p13), %s2389_s8, 16  }
0x16f5   : > { %3189 = vsyncadd (!%p2863_p13), %s2389_s8, 4294967280  ;;  %p32_p0 = scmp.ge.s32.totalorder %s3457_s15, 4   ;;  %s3995_s24 = smov %s3196_s25 }
0x16f6   : > { %s3996_s25 = smov %s3200_s26  ;;  %s3997_s26 = smov %s3468_s20 }
0x16f7   : > { %s3998_s27 = smov %s3457_s15  ;;  %34 = sbr.rel (!%p32_p0) target bundleno = 19 (0x13), region = 161 }
0x16fe   :  { %2393 = vsyncpa [#allocation3], 1 }
0x16ff   :  { %2395 = vsyncpa [#allocation3 + $0x1], 1 }
0x1700   :  { %2396 = vsyncpa [#allocation6], 1 }
0x1701   :  { %2397 = vsyncpa [#allocation9], 1 }
0x1702   :  { %2398 = vsyncpa [#allocation4], 1 }
0x1703   :  { %2400 = vsyncpa [#allocation4 + $0x1], 1 }

</bundles_post_ra>
